<compile_context>
chip_gen: v5e
topology: v5e:2x2
jax: 0.10.0
libtpu: 0.0.40
codegen_flags: <defaults>
</compile_context>

<pallas_src>
import numpy as np
import jax
import jax.numpy as jnp
from jax.experimental import pallas as pl
from jax.experimental.pallas import tpu as pltpu

LANE = 128   # TPU lane width
SUB = 8      # TPU sublane width (f32)


def _round8(n):
    return ((n + SUB - 1) // SUB) * SUB


def _slab_layout(D, H, L):
    """Row offsets for the packed parameter slab (all segments 8-row aligned)."""
    G = 4 * H
    W = max(G, LANE)                  # slab lane width; everything zero-padded to W
    off, r = {}, 0
    off["w_ih0"] = r; r += _round8(D)
    for l in range(1, L):
        off[f"w_ih{l}"] = r; r += _round8(H)
    for l in range(L):
        off[f"w_hh{l}"] = r; r += _round8(H)
    off["fc1_w"] = r; r += _round8(H)
    off["fc1_b"] = r; r += SUB
    off["fc2_w"] = r; r += W          # fc2 contraction dim == padded fc1 lane width
    off["fc2_b"] = r; r += SUB
    for l in range(L):
        off[f"bias{l}"] = r; r += SUB
    return off, r, W


def _make_kernel(T, Bp, L, H, D):
    G = 4 * H
    off, _, W = _slab_layout(D, H, L)

    def kernel(x_ref, p_ref, o_ref):
        # ---- parameters: static, 8-row-aligned slices of the packed slab --------
        w_ih = [p_ref[off["w_ih0"]:off["w_ih0"] + D, :G]]
        for l in range(1, L):
            a = off[f"w_ih{l}"]
            w_ih.append(p_ref[a:a + H, :G])
        w_hh, bias = [], []
        for l in range(L):
            a = off[f"w_hh{l}"]
            w_hh.append(p_ref[a:a + H, :G])
            b = off[f"bias{l}"]
            bias.append(p_ref[b:b + 1, :G])

        # ---- hoisted lane constants: single-tanh gate activation -----------------
        # PyTorch gate order i|f|g|o ; sigmoid(x) = 0.5*tanh(0.5*x) + 0.5, so
        # act = tanh(gates*scale)*scale + add_b with scale = 0.5 (i/f/o) or 1.0 (g).
        lane = jax.lax.broadcasted_iota(jnp.int32, (Bp, G), 1)
        is_g = (lane >= 2 * H) & (lane < 3 * H)
        scale = jnp.where(is_g, 1.0, 0.5).astype(jnp.float32)
        add_b = jnp.where(is_g, 0.0, 0.5).astype(jnp.float32)

        # ---- layer-0 input projection hoisted over all timesteps (one MXU call) --
        xproj0 = jnp.dot(x_ref[...], w_ih[0],
                         preferred_element_type=jnp.float32) + bias[0]   # (T*Bp, G)

        # ---- wavefront (diagonal) schedule over (layer, time) --------------------
        h = [jnp.zeros((Bp, H), jnp.float32) for _ in range(L)]
        c = [jnp.zeros((Bp, H), jnp.float32) for _ in range(L)]
        for s in range(T + L - 1):
            # Process l high -> low so h[l-1] still holds layer l-1's output at time t.
            for l in range(min(s, L - 1), -1, -1):
                t = s - l
                if t >= T:
                    continue
                if l == 0:
                    gates = xproj0[t * Bp:(t + 1) * Bp, :] + jnp.dot(
                        h[0], w_hh[0], preferred_element_type=jnp.float32)
                else:
                    gates = (jnp.dot(h[l - 1], w_ih[l],
                                     preferred_element_type=jnp.float32)
                             + jnp.dot(h[l], w_hh[l],
                                       preferred_element_type=jnp.float32)
                             + bias[l])
                act = jnp.tanh(gates * scale) * scale + add_b     # one EUP tanh/step
                i_g = act[:, 0 * H:1 * H]
                f_g = act[:, 1 * H:2 * H]
                g_g = act[:, 2 * H:3 * H]
                o_g = act[:, 3 * H:4 * H]
                c[l] = f_g * c[l] + i_g * g_g
                h[l] = o_g * jnp.tanh(c[l])

        # ---- classifier head: fc1 -> relu -> dropout(eval) -> fc2 -> sigmoid -----
        fc1_w = p_ref[off["fc1_w"]:off["fc1_w"] + H, :]
        fc1_b = p_ref[off["fc1_b"]:off["fc1_b"] + 1, :]
        fc2_w = p_ref[off["fc2_w"]:off["fc2_w"] + W, :]
        fc2_b = p_ref[off["fc2_b"]:off["fc2_b"] + 1, :]
        z = jnp.maximum(
            jnp.dot(h[L - 1], fc1_w, preferred_element_type=jnp.float32) + fc1_b, 0.0)
        # dropout: identity (eval mode)
        logits = jnp.dot(z, fc2_w, preferred_element_type=jnp.float32) + fc2_b
        o_ref[...] = jax.nn.sigmoid(logits)   # padded lanes = 0.5, sliced off outside

    return kernel


def rnn_classifier_forward(x, kparams):
    """x: (B, T, D) float32. Returns (B, num_classes) sigmoid probabilities."""
    B, T, D = x.shape
    H, L, C = kparams["H"], kparams["L"], kparams["C"]
    assert D == kparams["D"]
    Bp = _round8(B)                       # sublane-align batch -> aligned vreg slices
    if Bp != B:
        x = jnp.concatenate([x, jnp.zeros((Bp - B, T, D), x.dtype)], axis=0)
    # Time-major flat layout (row t*Bp + b): per-step blocks are aligned sublane windows.
    x_tm = jnp.transpose(x, (1, 0, 2)).reshape(T * Bp, D)
    _, _, W = _slab_layout(D, H, L)
    vmem = pl.BlockSpec(memory_space=pltpu.MemorySpace.VMEM)
    out_pad = pl.pallas_call(
        _make_kernel(T, Bp, L, H, D),
        out_shape=jax.ShapeDtypeStruct((Bp, W), jnp.float32),
        in_specs=[vmem, vmem],
        out_specs=vmem,
        # TODO(synk): at large batch, tile Bp over a ("parallel",) grid for v7x's 2 TCs.
    )(x_tm, kparams["slab"])
    return out_pad[:B, :C]


# ----------------------------- parameter plumbing -----------------------------

def init_raw_params(key, in_dim, hidden_layers, hidden_size, fc1_dim, num_classes):
    """PyTorch-layout parameters, U(-1/sqrt(H), 1/sqrt(H)) style init."""
    H, L = hidden_size, hidden_layers
    k = 1.0 / np.sqrt(H)
    keys = jax.random.split(key, 4 * L + 4)
    lstm = []
    for l in range(L):
        d_l = in_dim if l == 0 else H
        lstm.append(dict(
            w_ih=jax.random.uniform(keys[4 * l + 0], (4 * H, d_l), jnp.float32, -k, k),
            w_hh=jax.random.uniform(keys[4 * l + 1], (4 * H, H), jnp.float32, -k, k),
            b_ih=jax.random.uniform(keys[4 * l + 2], (4 * H,), jnp.float32, -k, k),
            b_hh=jax.random.uniform(keys[4 * l + 3], (4 * H,), jnp.float32, -k, k),
        ))
    kf = 1.0 / np.sqrt(H)
    fc1_w = jax.random.uniform(keys[4 * L + 0], (fc1_dim, H), jnp.float32, -kf, kf)
    fc1_b = jax.random.uniform(keys[4 * L + 1], (fc1_dim,), jnp.float32, -kf, kf)
    kf2 = 1.0 / np.sqrt(fc1_dim)
    fc2_w = jax.random.uniform(keys[4 * L + 2], (num_classes, fc1_dim), jnp.float32, -kf2, kf2)
    fc2_b = jax.random.uniform(keys[4 * L + 3], (num_classes,), jnp.float32, -kf2, kf2)
    return dict(lstm=lstm, fc1_w=fc1_w, fc1_b=fc1_b, fc2_w=fc2_w, fc2_b=fc2_b)


def prepare_kernel_params(raw):
    """Wrapper-side layout plumbing: transpose weights, pre-sum biases, pack one slab."""
    lstm = raw["lstm"]
    L = len(lstm)
    H = lstm[0]["w_hh"].shape[1]
    D = lstm[0]["w_ih"].shape[1]
    F1 = raw["fc1_w"].shape[0]
    C = raw["fc2_w"].shape[0]
    G = 4 * H
    off, rows, W = _slab_layout(D, H, L)
    slab = np.zeros((rows, W), np.float32)
    slab[off["w_ih0"]:off["w_ih0"] + D, :G] = np.asarray(lstm[0]["w_ih"]).T
    for l in range(1, L):
        a = off[f"w_ih{l}"]
        slab[a:a + H, :G] = np.asarray(lstm[l]["w_ih"]).T
    for l in range(L):
        a = off[f"w_hh{l}"]
        slab[a:a + H, :G] = np.asarray(lstm[l]["w_hh"]).T
        slab[off[f"bias{l}"], :G] = np.asarray(lstm[l]["b_ih"] + lstm[l]["b_hh"])
    slab[off["fc1_w"]:off["fc1_w"] + H, :F1] = np.asarray(raw["fc1_w"]).T
    slab[off["fc1_b"], :F1] = np.asarray(raw["fc1_b"])
    slab[off["fc2_w"]:off["fc2_w"] + F1, :C] = np.asarray(raw["fc2_w"]).T
    slab[off["fc2_b"], :C] = np.asarray(raw["fc2_b"])
    return dict(slab=jnp.asarray(slab), D=D, H=H, L=L, F1=F1, C=C)


# --------------------------------- reference ----------------------------------

def ref_forward(x, raw):
    """Pure-JAX reference mirroring the PyTorch module (eval mode, f32)."""
    B, T, D = x.shape
    lstm = raw["lstm"]
    H = lstm[0]["w_hh"].shape[1]
    layer_in = x
    h = jnp.zeros((B, H), jnp.float32)
    for p in lstm:
        w_ih, w_hh = p["w_ih"].T, p["w_hh"].T
        bias = (p["b_ih"] + p["b_hh"])[None, :]
        h = jnp.zeros((B, H), jnp.float32)
        c = jnp.zeros((B, H), jnp.float32)
        outs = []
        for t in range(T):
            gates = layer_in[:, t, :] @ w_ih + h @ w_hh + bias
            i_g = jax.nn.sigmoid(gates[:, 0 * H:1 * H])
            f_g = jax.nn.sigmoid(gates[:, 1 * H:2 * H])
            g_g = jnp.tanh(gates[:, 2 * H:3 * H])
            o_g = jax.nn.sigmoid(gates[:, 3 * H:4 * H])
            c = f_g * c + i_g * g_g
            h = o_g * jnp.tanh(c)
            outs.append(h)
        layer_in = jnp.stack(outs, axis=1)
    z = jnp.maximum(h @ raw["fc1_w"].T + raw["fc1_b"][None, :], 0.0)
    return jax.nn.sigmoid(z @ raw["fc2_w"].T + raw["fc2_b"][None, :])


if __name__ == "__main__":
    # Small shapes consistent with the module: batch=2, seq=8, in_dim=48,
    # hidden_layers=3, hidden_size=32 (so 4H = 128 lanes), fc1_dim=16, num_classes=1.
    B, T, D = 2, 8, 48
    L, H, F1, C = 3, 32, 16, 1

    key = jax.random.PRNGKey(0)
    k_x, k_p = jax.random.split(key)
    x = jax.random.normal(k_x, (B, T, D), jnp.float32)
    raw = init_raw_params(k_p, D, L, H, F1, C)
    kparams = prepare_kernel_params(raw)

    out = jax.block_until_ready(rnn_classifier_forward(x, kparams))
    ref = jax.block_until_ready(ref_forward(x, raw))

    np.testing.assert_allclose(np.asarray(out), np.asarray(ref), rtol=1e-3, atol=1e-3)
    assert out.shape == (B, C)

    print("KERNEL_OK")
</pallas_src>

<mosaic_0001>
module attributes {stable_mosaic.version = 11 : i64} {
  func.func @kernel(%arg0: memref<64x48xf32, #tpu.memory_space<vmem>>, %arg1: memref<408x128xf32, #tpu.memory_space<vmem>>, %arg2: memref<8x128xf32, #tpu.memory_space<vmem>>) attributes {dimension_semantics = [], scalar_prefetch = 0 : i64, scratch_operands = 0 : i64, tpu.core_type = #tpu.core_type<tc>} {
    %c0 = arith.constant 0 : index
    %c0_0 = arith.constant 0 : index
    %0 = vector.load %arg1[%c0, %c0_0] : memref<408x128xf32, #tpu.memory_space<vmem>>, vector<48x128xf32>
    %c48 = arith.constant 48 : index
    %c0_1 = arith.constant 0 : index
    %1 = vector.load %arg1[%c48, %c0_1] : memref<408x128xf32, #tpu.memory_space<vmem>>, vector<32x128xf32>
    %c80 = arith.constant 80 : index
    %c0_2 = arith.constant 0 : index
    %2 = vector.load %arg1[%c80, %c0_2] : memref<408x128xf32, #tpu.memory_space<vmem>>, vector<32x128xf32>
    %c112 = arith.constant 112 : index
    %c0_3 = arith.constant 0 : index
    %3 = vector.load %arg1[%c112, %c0_3] : memref<408x128xf32, #tpu.memory_space<vmem>>, vector<32x128xf32>
    %c384 = arith.constant 384 : index
    %c0_4 = arith.constant 0 : index
    %4 = vector.load %arg1[%c384, %c0_4] : memref<408x128xf32, #tpu.memory_space<vmem>>, vector<1x128xf32>
    %c144 = arith.constant 144 : index
    %c0_5 = arith.constant 0 : index
    %5 = vector.load %arg1[%c144, %c0_5] : memref<408x128xf32, #tpu.memory_space<vmem>>, vector<32x128xf32>
    %c392 = arith.constant 392 : index
    %c0_6 = arith.constant 0 : index
    %6 = vector.load %arg1[%c392, %c0_6] : memref<408x128xf32, #tpu.memory_space<vmem>>, vector<1x128xf32>
    %c176 = arith.constant 176 : index
    %c0_7 = arith.constant 0 : index
    %7 = vector.load %arg1[%c176, %c0_7] : memref<408x128xf32, #tpu.memory_space<vmem>>, vector<32x128xf32>
    %c400 = arith.constant 400 : index
    %c0_8 = arith.constant 0 : index
    %8 = vector.load %arg1[%c400, %c0_8] : memref<408x128xf32, #tpu.memory_space<vmem>>, vector<1x128xf32>
    %9 = tpu.iota {dimensions = array<i32: 1>} : vector<8x128xi32>
    %c64_i32 = arith.constant 64 : i32
    %10 = vector.broadcast %c64_i32 : i32 to vector<8x128xi32>
    %11 = arith.cmpi sge, %9, %10 : vector<8x128xi32>
    %c96_i32 = arith.constant 96 : i32
    %12 = vector.broadcast %c96_i32 : i32 to vector<8x128xi32>
    %13 = arith.cmpi slt, %9, %12 : vector<8x128xi32>
    %14 = arith.andi %11, %13 : vector<8x128xi1>
    %cst = arith.constant 1.000000e+00 : f32
    %cst_9 = arith.constant 5.000000e-01 : f32
    %15 = vector.broadcast %cst : f32 to vector<8x128xf32>
    %16 = vector.broadcast %cst_9 : f32 to vector<8x128xf32>
    %17 = arith.select %14, %15, %16 : vector<8x128xi1>, vector<8x128xf32>
    %cst_10 = arith.constant 0.000000e+00 : f32
    %cst_11 = arith.constant 5.000000e-01 : f32
    %18 = vector.broadcast %cst_10 : f32 to vector<8x128xf32>
    %19 = vector.broadcast %cst_11 : f32 to vector<8x128xf32>
    %20 = arith.select %14, %18, %19 : vector<8x128xi1>, vector<8x128xf32>
    %c0_12 = arith.constant 0 : index
    %c0_13 = arith.constant 0 : index
    %21 = vector.load %arg0[%c0_12, %c0_13] : memref<64x48xf32, #tpu.memory_space<vmem>>, vector<64x48xf32>
    %cst_14 = arith.constant dense<0.000000e+00> : vector<64x128xf32>
    %22 = tpu.matmul %21, %0, %cst_14 {dimension_numbers = #tpu.dot_dimension_numbers<[1], [0], [0], [1], [0, 0, 1, 1], [], []>} : vector<64x48xf32>, vector<48x128xf32>, vector<64x128xf32> -> vector<64x128xf32>
    %23 = vector.broadcast %4 : vector<1x128xf32> to vector<64x128xf32>
    %24 = arith.addf %22, %23 : vector<64x128xf32>
    %cst_15 = arith.constant 0.000000e+00 : f32
    %25 = vector.broadcast %cst_15 : f32 to vector<8x32xf32>
    %cst_16 = arith.constant 0.000000e+00 : f32
    %26 = vector.broadcast %cst_16 : f32 to vector<8x32xf32>
    %cst_17 = arith.constant 0.000000e+00 : f32
    %27 = vector.broadcast %cst_17 : f32 to vector<8x32xf32>
    %cst_18 = arith.constant 0.000000e+00 : f32
    %28 = vector.broadcast %cst_18 : f32 to vector<8x32xf32>
    %cst_19 = arith.constant 0.000000e+00 : f32
    %29 = vector.broadcast %cst_19 : f32 to vector<8x32xf32>
    %cst_20 = arith.constant 0.000000e+00 : f32
    %30 = vector.broadcast %cst_20 : f32 to vector<8x32xf32>
    %31 = vector.extract_strided_slice %24 {offsets = [0, 0], sizes = [8, 128], strides = [1, 1]} : vector<64x128xf32> to vector<8x128xf32>
    %cst_21 = arith.constant dense<0.000000e+00> : vector<8x128xf32>
    %32 = tpu.matmul %25, %3, %cst_21 {dimension_numbers = #tpu.dot_dimension_numbers<[1], [0], [0], [1], [0, 0, 1, 1], [], []>} : vector<8x32xf32>, vector<32x128xf32>, vector<8x128xf32> -> vector<8x128xf32>
    %33 = arith.addf %31, %32 : vector<8x128xf32>
    %34 = arith.mulf %33, %17 : vector<8x128xf32>
    %35 = math.tanh %34 : vector<8x128xf32>
    %36 = arith.mulf %35, %17 : vector<8x128xf32>
    %37 = arith.addf %36, %20 : vector<8x128xf32>
    %38 = vector.extract_strided_slice %37 {offsets = [0, 0], sizes = [8, 32], strides = [1, 1]} : vector<8x128xf32> to vector<8x32xf32>
    %39 = vector.extract_strided_slice %37 {offsets = [0, 32], sizes = [8, 32], strides = [1, 1]} : vector<8x128xf32> to vector<8x32xf32>
    %40 = vector.extract_strided_slice %37 {offsets = [0, 64], sizes = [8, 32], strides = [1, 1]} : vector<8x128xf32> to vector<8x32xf32>
    %41 = vector.extract_strided_slice %37 {offsets = [0, 96], sizes = [8, 32], strides = [1, 1]} : vector<8x128xf32> to vector<8x32xf32>
    %42 = arith.mulf %39, %28 : vector<8x32xf32>
    %43 = arith.mulf %38, %40 : vector<8x32xf32>
    %44 = arith.addf %42, %43 : vector<8x32xf32>
    %45 = math.tanh %44 : vector<8x32xf32>
    %46 = arith.mulf %41, %45 : vector<8x32xf32>
    %cst_22 = arith.constant dense<0.000000e+00> : vector<8x128xf32>
    %47 = tpu.matmul %46, %1, %cst_22 {dimension_numbers = #tpu.dot_dimension_numbers<[1], [0], [0], [1], [0, 0, 1, 1], [], []>} : vector<8x32xf32>, vector<32x128xf32>, vector<8x128xf32> -> vector<8x128xf32>
    %cst_23 = arith.constant dense<0.000000e+00> : vector<8x128xf32>
    %48 = tpu.matmul %26, %5, %cst_23 {dimension_numbers = #tpu.dot_dimension_numbers<[1], [0], [0], [1], [0, 0, 1, 1], [], []>} : vector<8x32xf32>, vector<32x128xf32>, vector<8x128xf32> -> vector<8x128xf32>
    %49 = arith.addf %47, %48 : vector<8x128xf32>
    %50 = vector.broadcast %6 : vector<1x128xf32> to vector<8x128xf32>
    %51 = arith.addf %49, %50 : vector<8x128xf32>
    %52 = arith.mulf %51, %17 : vector<8x128xf32>
    %53 = math.tanh %52 : vector<8x128xf32>
    %54 = arith.mulf %53, %17 : vector<8x128xf32>
    %55 = arith.addf %54, %20 : vector<8x128xf32>
    %56 = vector.extract_strided_slice %55 {offsets = [0, 0], sizes = [8, 32], strides = [1, 1]} : vector<8x128xf32> to vector<8x32xf32>
    %57 = vector.extract_strided_slice %55 {offsets = [0, 32], sizes = [8, 32], strides = [1, 1]} : vector<8x128xf32> to vector<8x32xf32>
    %58 = vector.extract_strided_slice %55 {offsets = [0, 64], sizes = [8, 32], strides = [1, 1]} : vector<8x128xf32> to vector<8x32xf32>
    %59 = vector.extract_strided_slice %55 {offsets = [0, 96], sizes = [8, 32], strides = [1, 1]} : vector<8x128xf32> to vector<8x32xf32>
    %60 = arith.mulf %57, %29 : vector<8x32xf32>
    %61 = arith.mulf %56, %58 : vector<8x32xf32>
    %62 = arith.addf %60, %61 : vector<8x32xf32>
    %63 = math.tanh %62 : vector<8x32xf32>
    %64 = arith.mulf %59, %63 : vector<8x32xf32>
    %65 = vector.extract_strided_slice %24 {offsets = [8, 0], sizes = [8, 128], strides = [1, 1]} : vector<64x128xf32> to vector<8x128xf32>
    %cst_24 = arith.constant dense<0.000000e+00> : vector<8x128xf32>
    %66 = tpu.matmul %46, %3, %cst_24 {dimension_numbers = #tpu.dot_dimension_numbers<[1], [0], [0], [1], [0, 0, 1, 1], [], []>} : vector<8x32xf32>, vector<32x128xf32>, vector<8x128xf32> -> vector<8x128xf32>
    %67 = arith.addf %65, %66 : vector<8x128xf32>
    %68 = arith.mulf %67, %17 : vector<8x128xf32>
    %69 = math.tanh %68 : vector<8x128xf32>
    %70 = arith.mulf %69, %17 : vector<8x128xf32>
    %71 = arith.addf %70, %20 : vector<8x128xf32>
    %72 = vector.extract_strided_slice %71 {offsets = [0, 0], sizes = [8, 32], strides = [1, 1]} : vector<8x128xf32> to vector<8x32xf32>
    %73 = vector.extract_strided_slice %71 {offsets = [0, 32], sizes = [8, 32], strides = [1, 1]} : vector<8x128xf32> to vector<8x32xf32>
    %74 = vector.extract_strided_slice %71 {offsets = [0, 64], sizes = [8, 32], strides = [1, 1]} : vector<8x128xf32> to vector<8x32xf32>
    %75 = vector.extract_strided_slice %71 {offsets = [0, 96], sizes = [8, 32], strides = [1, 1]} : vector<8x128xf32> to vector<8x32xf32>
    %76 = arith.mulf %73, %44 : vector<8x32xf32>
    %77 = arith.mulf %72, %74 : vector<8x32xf32>
    %78 = arith.addf %76, %77 : vector<8x32xf32>
    %79 = math.tanh %78 : vector<8x32xf32>
    %80 = arith.mulf %75, %79 : vector<8x32xf32>
    %cst_25 = arith.constant dense<0.000000e+00> : vector<8x128xf32>
    %81 = tpu.matmul %64, %2, %cst_25 {dimension_numbers = #tpu.dot_dimension_numbers<[1], [0], [0], [1], [0, 0, 1, 1], [], []>} : vector<8x32xf32>, vector<32x128xf32>, vector<8x128xf32> -> vector<8x128xf32>
    %cst_26 = arith.constant dense<0.000000e+00> : vector<8x128xf32>
    %82 = tpu.matmul %27, %7, %cst_26 {dimension_numbers = #tpu.dot_dimension_numbers<[1], [0], [0], [1], [0, 0, 1, 1], [], []>} : vector<8x32xf32>, vector<32x128xf32>, vector<8x128xf32> -> vector<8x128xf32>
    %83 = arith.addf %81, %82 : vector<8x128xf32>
    %84 = vector.broadcast %8 : vector<1x128xf32> to vector<8x128xf32>
    %85 = arith.addf %83, %84 : vector<8x128xf32>
    %86 = arith.mulf %85, %17 : vector<8x128xf32>
    %87 = math.tanh %86 : vector<8x128xf32>
    %88 = arith.mulf %87, %17 : vector<8x128xf32>
    %89 = arith.addf %88, %20 : vector<8x128xf32>
    %90 = vector.extract_strided_slice %89 {offsets = [0, 0], sizes = [8, 32], strides = [1, 1]} : vector<8x128xf32> to vector<8x32xf32>
    %91 = vector.extract_strided_slice %89 {offsets = [0, 32], sizes = [8, 32], strides = [1, 1]} : vector<8x128xf32> to vector<8x32xf32>
    %92 = vector.extract_strided_slice %89 {offsets = [0, 64], sizes = [8, 32], strides = [1, 1]} : vector<8x128xf32> to vector<8x32xf32>
    %93 = vector.extract_strided_slice %89 {offsets = [0, 96], sizes = [8, 32], strides = [1, 1]} : vector<8x128xf32> to vector<8x32xf32>
    %94 = arith.mulf %91, %30 : vector<8x32xf32>
    %95 = arith.mulf %90, %92 : vector<8x32xf32>
    %96 = arith.addf %94, %95 : vector<8x32xf32>
    %97 = math.tanh %96 : vector<8x32xf32>
    %98 = arith.mulf %93, %97 : vector<8x32xf32>
    %cst_27 = arith.constant dense<0.000000e+00> : vector<8x128xf32>
    %99 = tpu.matmul %80, %1, %cst_27 {dimension_numbers = #tpu.dot_dimension_numbers<[1], [0], [0], [1], [0, 0, 1, 1], [], []>} : vector<8x32xf32>, vector<32x128xf32>, vector<8x128xf32> -> vector<8x128xf32>
    %cst_28 = arith.constant dense<0.000000e+00> : vector<8x128xf32>
    %100 = tpu.matmul %64, %5, %cst_28 {dimension_numbers = #tpu.dot_dimension_numbers<[1], [0], [0], [1], [0, 0, 1, 1], [], []>} : vector<8x32xf32>, vector<32x128xf32>, vector<8x128xf32> -> vector<8x128xf32>
    %101 = arith.addf %99, %100 : vector<8x128xf32>
    %102 = vector.broadcast %6 : vector<1x128xf32> to vector<8x128xf32>
    %103 = arith.addf %101, %102 : vector<8x128xf32>
    %104 = arith.mulf %103, %17 : vector<8x128xf32>
    %105 = math.tanh %104 : vector<8x128xf32>
    %106 = arith.mulf %105, %17 : vector<8x128xf32>
    %107 = arith.addf %106, %20 : vector<8x128xf32>
    %108 = vector.extract_strided_slice %107 {offsets = [0, 0], sizes = [8, 32], strides = [1, 1]} : vector<8x128xf32> to vector<8x32xf32>
    %109 = vector.extract_strided_slice %107 {offsets = [0, 32], sizes = [8, 32], strides = [1, 1]} : vector<8x128xf32> to vector<8x32xf32>
    %110 = vector.extract_strided_slice %107 {offsets = [0, 64], sizes = [8, 32], strides = [1, 1]} : vector<8x128xf32> to vector<8x32xf32>
    %111 = vector.extract_strided_slice %107 {offsets = [0, 96], sizes = [8, 32], strides = [1, 1]} : vector<8x128xf32> to vector<8x32xf32>
    %112 = arith.mulf %109, %62 : vector<8x32xf32>
    %113 = arith.mulf %108, %110 : vector<8x32xf32>
    %114 = arith.addf %112, %113 : vector<8x32xf32>
    %115 = math.tanh %114 : vector<8x32xf32>
    %116 = arith.mulf %111, %115 : vector<8x32xf32>
    %117 = vector.extract_strided_slice %24 {offsets = [16, 0], sizes = [8, 128], strides = [1, 1]} : vector<64x128xf32> to vector<8x128xf32>
    %cst_29 = arith.constant dense<0.000000e+00> : vector<8x128xf32>
    %118 = tpu.matmul %80, %3, %cst_29 {dimension_numbers = #tpu.dot_dimension_numbers<[1], [0], [0], [1], [0, 0, 1, 1], [], []>} : vector<8x32xf32>, vector<32x128xf32>, vector<8x128xf32> -> vector<8x128xf32>
    %119 = arith.addf %117, %118 : vector<8x128xf32>
    %120 = arith.mulf %119, %17 : vector<8x128xf32>
    %121 = math.tanh %120 : vector<8x128xf32>
    %122 = arith.mulf %121, %17 : vector<8x128xf32>
    %123 = arith.addf %122, %20 : vector<8x128xf32>
    %124 = vector.extract_strided_slice %123 {offsets = [0, 0], sizes = [8, 32], strides = [1, 1]} : vector<8x128xf32> to vector<8x32xf32>
    %125 = vector.extract_strided_slice %123 {offsets = [0, 32], sizes = [8, 32], strides = [1, 1]} : vector<8x128xf32> to vector<8x32xf32>
    %126 = vector.extract_strided_slice %123 {offsets = [0, 64], sizes = [8, 32], strides = [1, 1]} : vector<8x128xf32> to vector<8x32xf32>
    %127 = vector.extract_strided_slice %123 {offsets = [0, 96], sizes = [8, 32], strides = [1, 1]} : vector<8x128xf32> to vector<8x32xf32>
    %128 = arith.mulf %125, %78 : vector<8x32xf32>
    %129 = arith.mulf %124, %126 : vector<8x32xf32>
    %130 = arith.addf %128, %129 : vector<8x32xf32>
    %131 = math.tanh %130 : vector<8x32xf32>
    %132 = arith.mulf %127, %131 : vector<8x32xf32>
    %cst_30 = arith.constant dense<0.000000e+00> : vector<8x128xf32>
    %133 = tpu.matmul %116, %2, %cst_30 {dimension_numbers = #tpu.dot_dimension_numbers<[1], [0], [0], [1], [0, 0, 1, 1], [], []>} : vector<8x32xf32>, vector<32x128xf32>, vector<8x128xf32> -> vector<8x128xf32>
    %cst_31 = arith.constant dense<0.000000e+00> : vector<8x128xf32>
    %134 = tpu.matmul %98, %7, %cst_31 {dimension_numbers = #tpu.dot_dimension_numbers<[1], [0], [0], [1], [0, 0, 1, 1], [], []>} : vector<8x32xf32>, vector<32x128xf32>, vector<8x128xf32> -> vector<8x128xf32>
    %135 = arith.addf %133, %134 : vector<8x128xf32>
    %136 = vector.broadcast %8 : vector<1x128xf32> to vector<8x128xf32>
    %137 = arith.addf %135, %136 : vector<8x128xf32>
    %138 = arith.mulf %137, %17 : vector<8x128xf32>
    %139 = math.tanh %138 : vector<8x128xf32>
    %140 = arith.mulf %139, %17 : vector<8x128xf32>
    %141 = arith.addf %140, %20 : vector<8x128xf32>
    %142 = vector.extract_strided_slice %141 {offsets = [0, 0], sizes = [8, 32], strides = [1, 1]} : vector<8x128xf32> to vector<8x32xf32>
    %143 = vector.extract_strided_slice %141 {offsets = [0, 32], sizes = [8, 32], strides = [1, 1]} : vector<8x128xf32> to vector<8x32xf32>
    %144 = vector.extract_strided_slice %141 {offsets = [0, 64], sizes = [8, 32], strides = [1, 1]} : vector<8x128xf32> to vector<8x32xf32>
    %145 = vector.extract_strided_slice %141 {offsets = [0, 96], sizes = [8, 32], strides = [1, 1]} : vector<8x128xf32> to vector<8x32xf32>
    %146 = arith.mulf %143, %96 : vector<8x32xf32>
    %147 = arith.mulf %142, %144 : vector<8x32xf32>
    %148 = arith.addf %146, %147 : vector<8x32xf32>
    %149 = math.tanh %148 : vector<8x32xf32>
    %150 = arith.mulf %145, %149 : vector<8x32xf32>
    %cst_32 = arith.constant dense<0.000000e+00> : vector<8x128xf32>
    %151 = tpu.matmul %132, %1, %cst_32 {dimension_numbers = #tpu.dot_dimension_numbers<[1], [0], [0], [1], [0, 0, 1, 1], [], []>} : vector<8x32xf32>, vector<32x128xf32>, vector<8x128xf32> -> vector<8x128xf32>
    %cst_33 = arith.constant dense<0.000000e+00> : vector<8x128xf32>
    %152 = tpu.matmul %116, %5, %cst_33 {dimension_numbers = #tpu.dot_dimension_numbers<[1], [0], [0], [1], [0, 0, 1, 1], [], []>} : vector<8x32xf32>, vector<32x128xf32>, vector<8x128xf32> -> vector<8x128xf32>
    %153 = arith.addf %151, %152 : vector<8x128xf32>
    %154 = vector.broadcast %6 : vector<1x128xf32> to vector<8x128xf32>
    %155 = arith.addf %153, %154 : vector<8x128xf32>
    %156 = arith.mulf %155, %17 : vector<8x128xf32>
    %157 = math.tanh %156 : vector<8x128xf32>
    %158 = arith.mulf %157, %17 : vector<8x128xf32>
    %159 = arith.addf %158, %20 : vector<8x128xf32>
    %160 = vector.extract_strided_slice %159 {offsets = [0, 0], sizes = [8, 32], strides = [1, 1]} : vector<8x128xf32> to vector<8x32xf32>
    %161 = vector.extract_strided_slice %159 {offsets = [0, 32], sizes = [8, 32], strides = [1, 1]} : vector<8x128xf32> to vector<8x32xf32>
    %162 = vector.extract_strided_slice %159 {offsets = [0, 64], sizes = [8, 32], strides = [1, 1]} : vector<8x128xf32> to vector<8x32xf32>
    %163 = vector.extract_strided_slice %159 {offsets = [0, 96], sizes = [8, 32], strides = [1, 1]} : vector<8x128xf32> to vector<8x32xf32>
    %164 = arith.mulf %161, %114 : vector<8x32xf32>
    %165 = arith.mulf %160, %162 : vector<8x32xf32>
    %166 = arith.addf %164, %165 : vector<8x32xf32>
    %167 = math.tanh %166 : vector<8x32xf32>
    %168 = arith.mulf %163, %167 : vector<8x32xf32>
    %169 = vector.extract_strided_slice %24 {offsets = [24, 0], sizes = [8, 128], strides = [1, 1]} : vector<64x128xf32> to vector<8x128xf32>
    %cst_34 = arith.constant dense<0.000000e+00> : vector<8x128xf32>
    %170 = tpu.matmul %132, %3, %cst_34 {dimension_numbers = #tpu.dot_dimension_numbers<[1], [0], [0], [1], [0, 0, 1, 1], [], []>} : vector<8x32xf32>, vector<32x128xf32>, vector<8x128xf32> -> vector<8x128xf32>
    %171 = arith.addf %169, %170 : vector<8x128xf32>
    %172 = arith.mulf %171, %17 : vector<8x128xf32>
    %173 = math.tanh %172 : vector<8x128xf32>
    %174 = arith.mulf %173, %17 : vector<8x128xf32>
    %175 = arith.addf %174, %20 : vector<8x128xf32>
    %176 = vector.extract_strided_slice %175 {offsets = [0, 0], sizes = [8, 32], strides = [1, 1]} : vector<8x128xf32> to vector<8x32xf32>
    %177 = vector.extract_strided_slice %175 {offsets = [0, 32], sizes = [8, 32], strides = [1, 1]} : vector<8x128xf32> to vector<8x32xf32>
    %178 = vector.extract_strided_slice %175 {offsets = [0, 64], sizes = [8, 32], strides = [1, 1]} : vector<8x128xf32> to vector<8x32xf32>
    %179 = vector.extract_strided_slice %175 {offsets = [0, 96], sizes = [8, 32], strides = [1, 1]} : vector<8x128xf32> to vector<8x32xf32>
    %180 = arith.mulf %177, %130 : vector<8x32xf32>
    %181 = arith.mulf %176, %178 : vector<8x32xf32>
    %182 = arith.addf %180, %181 : vector<8x32xf32>
    %183 = math.tanh %182 : vector<8x32xf32>
    %184 = arith.mulf %179, %183 : vector<8x32xf32>
    %cst_35 = arith.constant dense<0.000000e+00> : vector<8x128xf32>
    %185 = tpu.matmul %168, %2, %cst_35 {dimension_numbers = #tpu.dot_dimension_numbers<[1], [0], [0], [1], [0, 0, 1, 1], [], []>} : vector<8x32xf32>, vector<32x128xf32>, vector<8x128xf32> -> vector<8x128xf32>
    %cst_36 = arith.constant dense<0.000000e+00> : vector<8x128xf32>
    %186 = tpu.matmul %150, %7, %cst_36 {dimension_numbers = #tpu.dot_dimension_numbers<[1], [0], [0], [1], [0, 0, 1, 1], [], []>} : vector<8x32xf32>, vector<32x128xf32>, vector<8x128xf32> -> vector<8x128xf32>
    %187 = arith.addf %185, %186 : vector<8x128xf32>
    %188 = vector.broadcast %8 : vector<1x128xf32> to vector<8x128xf32>
    %189 = arith.addf %187, %188 : vector<8x128xf32>
    %190 = arith.mulf %189, %17 : vector<8x128xf32>
    %191 = math.tanh %190 : vector<8x128xf32>
    %192 = arith.mulf %191, %17 : vector<8x128xf32>
    %193 = arith.addf %192, %20 : vector<8x128xf32>
    %194 = vector.extract_strided_slice %193 {offsets = [0, 0], sizes = [8, 32], strides = [1, 1]} : vector<8x128xf32> to vector<8x32xf32>
    %195 = vector.extract_strided_slice %193 {offsets = [0, 32], sizes = [8, 32], strides = [1, 1]} : vector<8x128xf32> to vector<8x32xf32>
    %196 = vector.extract_strided_slice %193 {offsets = [0, 64], sizes = [8, 32], strides = [1, 1]} : vector<8x128xf32> to vector<8x32xf32>
    %197 = vector.extract_strided_slice %193 {offsets = [0, 96], sizes = [8, 32], strides = [1, 1]} : vector<8x128xf32> to vector<8x32xf32>
    %198 = arith.mulf %195, %148 : vector<8x32xf32>
    %199 = arith.mulf %194, %196 : vector<8x32xf32>
    %200 = arith.addf %198, %199 : vector<8x32xf32>
    %201 = math.tanh %200 : vector<8x32xf32>
    %202 = arith.mulf %197, %201 : vector<8x32xf32>
    %cst_37 = arith.constant dense<0.000000e+00> : vector<8x128xf32>
    %203 = tpu.matmul %184, %1, %cst_37 {dimension_numbers = #tpu.dot_dimension_numbers<[1], [0], [0], [1], [0, 0, 1, 1], [], []>} : vector<8x32xf32>, vector<32x128xf32>, vector<8x128xf32> -> vector<8x128xf32>
    %cst_38 = arith.constant dense<0.000000e+00> : vector<8x128xf32>
    %204 = tpu.matmul %168, %5, %cst_38 {dimension_numbers = #tpu.dot_dimension_numbers<[1], [0], [0], [1], [0, 0, 1, 1], [], []>} : vector<8x32xf32>, vector<32x128xf32>, vector<8x128xf32> -> vector<8x128xf32>
    %205 = arith.addf %203, %204 : vector<8x128xf32>
    %206 = vector.broadcast %6 : vector<1x128xf32> to vector<8x128xf32>
    %207 = arith.addf %205, %206 : vector<8x128xf32>
    %208 = arith.mulf %207, %17 : vector<8x128xf32>
    %209 = math.tanh %208 : vector<8x128xf32>
    %210 = arith.mulf %209, %17 : vector<8x128xf32>
    %211 = arith.addf %210, %20 : vector<8x128xf32>
    %212 = vector.extract_strided_slice %211 {offsets = [0, 0], sizes = [8, 32], strides = [1, 1]} : vector<8x128xf32> to vector<8x32xf32>
    %213 = vector.extract_strided_slice %211 {offsets = [0, 32], sizes = [8, 32], strides = [1, 1]} : vector<8x128xf32> to vector<8x32xf32>
    %214 = vector.extract_strided_slice %211 {offsets = [0, 64], sizes = [8, 32], strides = [1, 1]} : vector<8x128xf32> to vector<8x32xf32>
    %215 = vector.extract_strided_slice %211 {offsets = [0, 96], sizes = [8, 32], strides = [1, 1]} : vector<8x128xf32> to vector<8x32xf32>
    %216 = arith.mulf %213, %166 : vector<8x32xf32>
    %217 = arith.mulf %212, %214 : vector<8x32xf32>
    %218 = arith.addf %216, %217 : vector<8x32xf32>
    %219 = math.tanh %218 : vector<8x32xf32>
    %220 = arith.mulf %215, %219 : vector<8x32xf32>
    %221 = vector.extract_strided_slice %24 {offsets = [32, 0], sizes = [8, 128], strides = [1, 1]} : vector<64x128xf32> to vector<8x128xf32>
    %cst_39 = arith.constant dense<0.000000e+00> : vector<8x128xf32>
    %222 = tpu.matmul %184, %3, %cst_39 {dimension_numbers = #tpu.dot_dimension_numbers<[1], [0], [0], [1], [0, 0, 1, 1], [], []>} : vector<8x32xf32>, vector<32x128xf32>, vector<8x128xf32> -> vector<8x128xf32>
    %223 = arith.addf %221, %222 : vector<8x128xf32>
    %224 = arith.mulf %223, %17 : vector<8x128xf32>
    %225 = math.tanh %224 : vector<8x128xf32>
    %226 = arith.mulf %225, %17 : vector<8x128xf32>
    %227 = arith.addf %226, %20 : vector<8x128xf32>
    %228 = vector.extract_strided_slice %227 {offsets = [0, 0], sizes = [8, 32], strides = [1, 1]} : vector<8x128xf32> to vector<8x32xf32>
    %229 = vector.extract_strided_slice %227 {offsets = [0, 32], sizes = [8, 32], strides = [1, 1]} : vector<8x128xf32> to vector<8x32xf32>
    %230 = vector.extract_strided_slice %227 {offsets = [0, 64], sizes = [8, 32], strides = [1, 1]} : vector<8x128xf32> to vector<8x32xf32>
    %231 = vector.extract_strided_slice %227 {offsets = [0, 96], sizes = [8, 32], strides = [1, 1]} : vector<8x128xf32> to vector<8x32xf32>
    %232 = arith.mulf %229, %182 : vector<8x32xf32>
    %233 = arith.mulf %228, %230 : vector<8x32xf32>
    %234 = arith.addf %232, %233 : vector<8x32xf32>
    %235 = math.tanh %234 : vector<8x32xf32>
    %236 = arith.mulf %231, %235 : vector<8x32xf32>
    %cst_40 = arith.constant dense<0.000000e+00> : vector<8x128xf32>
    %237 = tpu.matmul %220, %2, %cst_40 {dimension_numbers = #tpu.dot_dimension_numbers<[1], [0], [0], [1], [0, 0, 1, 1], [], []>} : vector<8x32xf32>, vector<32x128xf32>, vector<8x128xf32> -> vector<8x128xf32>
    %cst_41 = arith.constant dense<0.000000e+00> : vector<8x128xf32>
    %238 = tpu.matmul %202, %7, %cst_41 {dimension_numbers = #tpu.dot_dimension_numbers<[1], [0], [0], [1], [0, 0, 1, 1], [], []>} : vector<8x32xf32>, vector<32x128xf32>, vector<8x128xf32> -> vector<8x128xf32>
    %239 = arith.addf %237, %238 : vector<8x128xf32>
    %240 = vector.broadcast %8 : vector<1x128xf32> to vector<8x128xf32>
    %241 = arith.addf %239, %240 : vector<8x128xf32>
    %242 = arith.mulf %241, %17 : vector<8x128xf32>
    %243 = math.tanh %242 : vector<8x128xf32>
    %244 = arith.mulf %243, %17 : vector<8x128xf32>
    %245 = arith.addf %244, %20 : vector<8x128xf32>
    %246 = vector.extract_strided_slice %245 {offsets = [0, 0], sizes = [8, 32], strides = [1, 1]} : vector<8x128xf32> to vector<8x32xf32>
    %247 = vector.extract_strided_slice %245 {offsets = [0, 32], sizes = [8, 32], strides = [1, 1]} : vector<8x128xf32> to vector<8x32xf32>
    %248 = vector.extract_strided_slice %245 {offsets = [0, 64], sizes = [8, 32], strides = [1, 1]} : vector<8x128xf32> to vector<8x32xf32>
    %249 = vector.extract_strided_slice %245 {offsets = [0, 96], sizes = [8, 32], strides = [1, 1]} : vector<8x128xf32> to vector<8x32xf32>
    %250 = arith.mulf %247, %200 : vector<8x32xf32>
    %251 = arith.mulf %246, %248 : vector<8x32xf32>
    %252 = arith.addf %250, %251 : vector<8x32xf32>
    %253 = math.tanh %252 : vector<8x32xf32>
    %254 = arith.mulf %249, %253 : vector<8x32xf32>
    %cst_42 = arith.constant dense<0.000000e+00> : vector<8x128xf32>
    %255 = tpu.matmul %236, %1, %cst_42 {dimension_numbers = #tpu.dot_dimension_numbers<[1], [0], [0], [1], [0, 0, 1, 1], [], []>} : vector<8x32xf32>, vector<32x128xf32>, vector<8x128xf32> -> vector<8x128xf32>
    %cst_43 = arith.constant dense<0.000000e+00> : vector<8x128xf32>
    %256 = tpu.matmul %220, %5, %cst_43 {dimension_numbers = #tpu.dot_dimension_numbers<[1], [0], [0], [1], [0, 0, 1, 1], [], []>} : vector<8x32xf32>, vector<32x128xf32>, vector<8x128xf32> -> vector<8x128xf32>
    %257 = arith.addf %255, %256 : vector<8x128xf32>
    %258 = vector.broadcast %6 : vector<1x128xf32> to vector<8x128xf32>
    %259 = arith.addf %257, %258 : vector<8x128xf32>
    %260 = arith.mulf %259, %17 : vector<8x128xf32>
    %261 = math.tanh %260 : vector<8x128xf32>
    %262 = arith.mulf %261, %17 : vector<8x128xf32>
    %263 = arith.addf %262, %20 : vector<8x128xf32>
    %264 = vector.extract_strided_slice %263 {offsets = [0, 0], sizes = [8, 32], strides = [1, 1]} : vector<8x128xf32> to vector<8x32xf32>
    %265 = vector.extract_strided_slice %263 {offsets = [0, 32], sizes = [8, 32], strides = [1, 1]} : vector<8x128xf32> to vector<8x32xf32>
    %266 = vector.extract_strided_slice %263 {offsets = [0, 64], sizes = [8, 32], strides = [1, 1]} : vector<8x128xf32> to vector<8x32xf32>
    %267 = vector.extract_strided_slice %263 {offsets = [0, 96], sizes = [8, 32], strides = [1, 1]} : vector<8x128xf32> to vector<8x32xf32>
    %268 = arith.mulf %265, %218 : vector<8x32xf32>
    %269 = arith.mulf %264, %266 : vector<8x32xf32>
    %270 = arith.addf %268, %269 : vector<8x32xf32>
    %271 = math.tanh %270 : vector<8x32xf32>
    %272 = arith.mulf %267, %271 : vector<8x32xf32>
    %273 = vector.extract_strided_slice %24 {offsets = [40, 0], sizes = [8, 128], strides = [1, 1]} : vector<64x128xf32> to vector<8x128xf32>
    %cst_44 = arith.constant dense<0.000000e+00> : vector<8x128xf32>
    %274 = tpu.matmul %236, %3, %cst_44 {dimension_numbers = #tpu.dot_dimension_numbers<[1], [0], [0], [1], [0, 0, 1, 1], [], []>} : vector<8x32xf32>, vector<32x128xf32>, vector<8x128xf32> -> vector<8x128xf32>
    %275 = arith.addf %273, %274 : vector<8x128xf32>
    %276 = arith.mulf %275, %17 : vector<8x128xf32>
    %277 = math.tanh %276 : vector<8x128xf32>
    %278 = arith.mulf %277, %17 : vector<8x128xf32>
    %279 = arith.addf %278, %20 : vector<8x128xf32>
    %280 = vector.extract_strided_slice %279 {offsets = [0, 0], sizes = [8, 32], strides = [1, 1]} : vector<8x128xf32> to vector<8x32xf32>
    %281 = vector.extract_strided_slice %279 {offsets = [0, 32], sizes = [8, 32], strides = [1, 1]} : vector<8x128xf32> to vector<8x32xf32>
    %282 = vector.extract_strided_slice %279 {offsets = [0, 64], sizes = [8, 32], strides = [1, 1]} : vector<8x128xf32> to vector<8x32xf32>
    %283 = vector.extract_strided_slice %279 {offsets = [0, 96], sizes = [8, 32], strides = [1, 1]} : vector<8x128xf32> to vector<8x32xf32>
    %284 = arith.mulf %281, %234 : vector<8x32xf32>
    %285 = arith.mulf %280, %282 : vector<8x32xf32>
    %286 = arith.addf %284, %285 : vector<8x32xf32>
    %287 = math.tanh %286 : vector<8x32xf32>
    %288 = arith.mulf %283, %287 : vector<8x32xf32>
    %cst_45 = arith.constant dense<0.000000e+00> : vector<8x128xf32>
    %289 = tpu.matmul %272, %2, %cst_45 {dimension_numbers = #tpu.dot_dimension_numbers<[1], [0], [0], [1], [0, 0, 1, 1], [], []>} : vector<8x32xf32>, vector<32x128xf32>, vector<8x128xf32> -> vector<8x128xf32>
    %cst_46 = arith.constant dense<0.000000e+00> : vector<8x128xf32>
    %290 = tpu.matmul %254, %7, %cst_46 {dimension_numbers = #tpu.dot_dimension_numbers<[1], [0], [0], [1], [0, 0, 1, 1], [], []>} : vector<8x32xf32>, vector<32x128xf32>, vector<8x128xf32> -> vector<8x128xf32>
    %291 = arith.addf %289, %290 : vector<8x128xf32>
    %292 = vector.broadcast %8 : vector<1x128xf32> to vector<8x128xf32>
    %293 = arith.addf %291, %292 : vector<8x128xf32>
    %294 = arith.mulf %293, %17 : vector<8x128xf32>
    %295 = math.tanh %294 : vector<8x128xf32>
    %296 = arith.mulf %295, %17 : vector<8x128xf32>
    %297 = arith.addf %296, %20 : vector<8x128xf32>
    %298 = vector.extract_strided_slice %297 {offsets = [0, 0], sizes = [8, 32], strides = [1, 1]} : vector<8x128xf32> to vector<8x32xf32>
    %299 = vector.extract_strided_slice %297 {offsets = [0, 32], sizes = [8, 32], strides = [1, 1]} : vector<8x128xf32> to vector<8x32xf32>
    %300 = vector.extract_strided_slice %297 {offsets = [0, 64], sizes = [8, 32], strides = [1, 1]} : vector<8x128xf32> to vector<8x32xf32>
    %301 = vector.extract_strided_slice %297 {offsets = [0, 96], sizes = [8, 32], strides = [1, 1]} : vector<8x128xf32> to vector<8x32xf32>
    %302 = arith.mulf %299, %252 : vector<8x32xf32>
    %303 = arith.mulf %298, %300 : vector<8x32xf32>
    %304 = arith.addf %302, %303 : vector<8x32xf32>
    %305 = math.tanh %304 : vector<8x32xf32>
    %306 = arith.mulf %301, %305 : vector<8x32xf32>
    %cst_47 = arith.constant dense<0.000000e+00> : vector<8x128xf32>
    %307 = tpu.matmul %288, %1, %cst_47 {dimension_numbers = #tpu.dot_dimension_numbers<[1], [0], [0], [1], [0, 0, 1, 1], [], []>} : vector<8x32xf32>, vector<32x128xf32>, vector<8x128xf32> -> vector<8x128xf32>
    %cst_48 = arith.constant dense<0.000000e+00> : vector<8x128xf32>
    %308 = tpu.matmul %272, %5, %cst_48 {dimension_numbers = #tpu.dot_dimension_numbers<[1], [0], [0], [1], [0, 0, 1, 1], [], []>} : vector<8x32xf32>, vector<32x128xf32>, vector<8x128xf32> -> vector<8x128xf32>
    %309 = arith.addf %307, %308 : vector<8x128xf32>
    %310 = vector.broadcast %6 : vector<1x128xf32> to vector<8x128xf32>
    %311 = arith.addf %309, %310 : vector<8x128xf32>
    %312 = arith.mulf %311, %17 : vector<8x128xf32>
    %313 = math.tanh %312 : vector<8x128xf32>
    %314 = arith.mulf %313, %17 : vector<8x128xf32>
    %315 = arith.addf %314, %20 : vector<8x128xf32>
    %316 = vector.extract_strided_slice %315 {offsets = [0, 0], sizes = [8, 32], strides = [1, 1]} : vector<8x128xf32> to vector<8x32xf32>
    %317 = vector.extract_strided_slice %315 {offsets = [0, 32], sizes = [8, 32], strides = [1, 1]} : vector<8x128xf32> to vector<8x32xf32>
    %318 = vector.extract_strided_slice %315 {offsets = [0, 64], sizes = [8, 32], strides = [1, 1]} : vector<8x128xf32> to vector<8x32xf32>
    %319 = vector.extract_strided_slice %315 {offsets = [0, 96], sizes = [8, 32], strides = [1, 1]} : vector<8x128xf32> to vector<8x32xf32>
    %320 = arith.mulf %317, %270 : vector<8x32xf32>
    %321 = arith.mulf %316, %318 : vector<8x32xf32>
    %322 = arith.addf %320, %321 : vector<8x32xf32>
    %323 = math.tanh %322 : vector<8x32xf32>
    %324 = arith.mulf %319, %323 : vector<8x32xf32>
    %325 = vector.extract_strided_slice %24 {offsets = [48, 0], sizes = [8, 128], strides = [1, 1]} : vector<64x128xf32> to vector<8x128xf32>
    %cst_49 = arith.constant dense<0.000000e+00> : vector<8x128xf32>
    %326 = tpu.matmul %288, %3, %cst_49 {dimension_numbers = #tpu.dot_dimension_numbers<[1], [0], [0], [1], [0, 0, 1, 1], [], []>} : vector<8x32xf32>, vector<32x128xf32>, vector<8x128xf32> -> vector<8x128xf32>
    %327 = arith.addf %325, %326 : vector<8x128xf32>
    %328 = arith.mulf %327, %17 : vector<8x128xf32>
    %329 = math.tanh %328 : vector<8x128xf32>
    %330 = arith.mulf %329, %17 : vector<8x128xf32>
    %331 = arith.addf %330, %20 : vector<8x128xf32>
    %332 = vector.extract_strided_slice %331 {offsets = [0, 0], sizes = [8, 32], strides = [1, 1]} : vector<8x128xf32> to vector<8x32xf32>
    %333 = vector.extract_strided_slice %331 {offsets = [0, 32], sizes = [8, 32], strides = [1, 1]} : vector<8x128xf32> to vector<8x32xf32>
    %334 = vector.extract_strided_slice %331 {offsets = [0, 64], sizes = [8, 32], strides = [1, 1]} : vector<8x128xf32> to vector<8x32xf32>
    %335 = vector.extract_strided_slice %331 {offsets = [0, 96], sizes = [8, 32], strides = [1, 1]} : vector<8x128xf32> to vector<8x32xf32>
    %336 = arith.mulf %333, %286 : vector<8x32xf32>
    %337 = arith.mulf %332, %334 : vector<8x32xf32>
    %338 = arith.addf %336, %337 : vector<8x32xf32>
    %339 = math.tanh %338 : vector<8x32xf32>
    %340 = arith.mulf %335, %339 : vector<8x32xf32>
    %cst_50 = arith.constant dense<0.000000e+00> : vector<8x128xf32>
    %341 = tpu.matmul %324, %2, %cst_50 {dimension_numbers = #tpu.dot_dimension_numbers<[1], [0], [0], [1], [0, 0, 1, 1], [], []>} : vector<8x32xf32>, vector<32x128xf32>, vector<8x128xf32> -> vector<8x128xf32>
    %cst_51 = arith.constant dense<0.000000e+00> : vector<8x128xf32>
    %342 = tpu.matmul %306, %7, %cst_51 {dimension_numbers = #tpu.dot_dimension_numbers<[1], [0], [0], [1], [0, 0, 1, 1], [], []>} : vector<8x32xf32>, vector<32x128xf32>, vector<8x128xf32> -> vector<8x128xf32>
    %343 = arith.addf %341, %342 : vector<8x128xf32>
    %344 = vector.broadcast %8 : vector<1x128xf32> to vector<8x128xf32>
    %345 = arith.addf %343, %344 : vector<8x128xf32>
    %346 = arith.mulf %345, %17 : vector<8x128xf32>
    %347 = math.tanh %346 : vector<8x128xf32>
    %348 = arith.mulf %347, %17 : vector<8x128xf32>
    %349 = arith.addf %348, %20 : vector<8x128xf32>
    %350 = vector.extract_strided_slice %349 {offsets = [0, 0], sizes = [8, 32], strides = [1, 1]} : vector<8x128xf32> to vector<8x32xf32>
    %351 = vector.extract_strided_slice %349 {offsets = [0, 32], sizes = [8, 32], strides = [1, 1]} : vector<8x128xf32> to vector<8x32xf32>
    %352 = vector.extract_strided_slice %349 {offsets = [0, 64], sizes = [8, 32], strides = [1, 1]} : vector<8x128xf32> to vector<8x32xf32>
    %353 = vector.extract_strided_slice %349 {offsets = [0, 96], sizes = [8, 32], strides = [1, 1]} : vector<8x128xf32> to vector<8x32xf32>
    %354 = arith.mulf %351, %304 : vector<8x32xf32>
    %355 = arith.mulf %350, %352 : vector<8x32xf32>
    %356 = arith.addf %354, %355 : vector<8x32xf32>
    %357 = math.tanh %356 : vector<8x32xf32>
    %358 = arith.mulf %353, %357 : vector<8x32xf32>
    %cst_52 = arith.constant dense<0.000000e+00> : vector<8x128xf32>
    %359 = tpu.matmul %340, %1, %cst_52 {dimension_numbers = #tpu.dot_dimension_numbers<[1], [0], [0], [1], [0, 0, 1, 1], [], []>} : vector<8x32xf32>, vector<32x128xf32>, vector<8x128xf32> -> vector<8x128xf32>
    %cst_53 = arith.constant dense<0.000000e+00> : vector<8x128xf32>
    %360 = tpu.matmul %324, %5, %cst_53 {dimension_numbers = #tpu.dot_dimension_numbers<[1], [0], [0], [1], [0, 0, 1, 1], [], []>} : vector<8x32xf32>, vector<32x128xf32>, vector<8x128xf32> -> vector<8x128xf32>
    %361 = arith.addf %359, %360 : vector<8x128xf32>
    %362 = vector.broadcast %6 : vector<1x128xf32> to vector<8x128xf32>
    %363 = arith.addf %361, %362 : vector<8x128xf32>
    %364 = arith.mulf %363, %17 : vector<8x128xf32>
    %365 = math.tanh %364 : vector<8x128xf32>
    %366 = arith.mulf %365, %17 : vector<8x128xf32>
    %367 = arith.addf %366, %20 : vector<8x128xf32>
    %368 = vector.extract_strided_slice %367 {offsets = [0, 0], sizes = [8, 32], strides = [1, 1]} : vector<8x128xf32> to vector<8x32xf32>
    %369 = vector.extract_strided_slice %367 {offsets = [0, 32], sizes = [8, 32], strides = [1, 1]} : vector<8x128xf32> to vector<8x32xf32>
    %370 = vector.extract_strided_slice %367 {offsets = [0, 64], sizes = [8, 32], strides = [1, 1]} : vector<8x128xf32> to vector<8x32xf32>
    %371 = vector.extract_strided_slice %367 {offsets = [0, 96], sizes = [8, 32], strides = [1, 1]} : vector<8x128xf32> to vector<8x32xf32>
    %372 = arith.mulf %369, %322 : vector<8x32xf32>
    %373 = arith.mulf %368, %370 : vector<8x32xf32>
    %374 = arith.addf %372, %373 : vector<8x32xf32>
    %375 = math.tanh %374 : vector<8x32xf32>
    %376 = arith.mulf %371, %375 : vector<8x32xf32>
    %377 = vector.extract_strided_slice %24 {offsets = [56, 0], sizes = [8, 128], strides = [1, 1]} : vector<64x128xf32> to vector<8x128xf32>
    %cst_54 = arith.constant dense<0.000000e+00> : vector<8x128xf32>
    %378 = tpu.matmul %340, %3, %cst_54 {dimension_numbers = #tpu.dot_dimension_numbers<[1], [0], [0], [1], [0, 0, 1, 1], [], []>} : vector<8x32xf32>, vector<32x128xf32>, vector<8x128xf32> -> vector<8x128xf32>
    %379 = arith.addf %377, %378 : vector<8x128xf32>
    %380 = arith.mulf %379, %17 : vector<8x128xf32>
    %381 = math.tanh %380 : vector<8x128xf32>
    %382 = arith.mulf %381, %17 : vector<8x128xf32>
    %383 = arith.addf %382, %20 : vector<8x128xf32>
    %384 = vector.extract_strided_slice %383 {offsets = [0, 0], sizes = [8, 32], strides = [1, 1]} : vector<8x128xf32> to vector<8x32xf32>
    %385 = vector.extract_strided_slice %383 {offsets = [0, 32], sizes = [8, 32], strides = [1, 1]} : vector<8x128xf32> to vector<8x32xf32>
    %386 = vector.extract_strided_slice %383 {offsets = [0, 64], sizes = [8, 32], strides = [1, 1]} : vector<8x128xf32> to vector<8x32xf32>
    %387 = vector.extract_strided_slice %383 {offsets = [0, 96], sizes = [8, 32], strides = [1, 1]} : vector<8x128xf32> to vector<8x32xf32>
    %388 = arith.mulf %385, %338 : vector<8x32xf32>
    %389 = arith.mulf %384, %386 : vector<8x32xf32>
    %390 = arith.addf %388, %389 : vector<8x32xf32>
    %391 = math.tanh %390 : vector<8x32xf32>
    %392 = arith.mulf %387, %391 : vector<8x32xf32>
    %cst_55 = arith.constant dense<0.000000e+00> : vector<8x128xf32>
    %393 = tpu.matmul %376, %2, %cst_55 {dimension_numbers = #tpu.dot_dimension_numbers<[1], [0], [0], [1], [0, 0, 1, 1], [], []>} : vector<8x32xf32>, vector<32x128xf32>, vector<8x128xf32> -> vector<8x128xf32>
    %cst_56 = arith.constant dense<0.000000e+00> : vector<8x128xf32>
    %394 = tpu.matmul %358, %7, %cst_56 {dimension_numbers = #tpu.dot_dimension_numbers<[1], [0], [0], [1], [0, 0, 1, 1], [], []>} : vector<8x32xf32>, vector<32x128xf32>, vector<8x128xf32> -> vector<8x128xf32>
    %395 = arith.addf %393, %394 : vector<8x128xf32>
    %396 = vector.broadcast %8 : vector<1x128xf32> to vector<8x128xf32>
    %397 = arith.addf %395, %396 : vector<8x128xf32>
    %398 = arith.mulf %397, %17 : vector<8x128xf32>
    %399 = math.tanh %398 : vector<8x128xf32>
    %400 = arith.mulf %399, %17 : vector<8x128xf32>
    %401 = arith.addf %400, %20 : vector<8x128xf32>
    %402 = vector.extract_strided_slice %401 {offsets = [0, 0], sizes = [8, 32], strides = [1, 1]} : vector<8x128xf32> to vector<8x32xf32>
    %403 = vector.extract_strided_slice %401 {offsets = [0, 32], sizes = [8, 32], strides = [1, 1]} : vector<8x128xf32> to vector<8x32xf32>
    %404 = vector.extract_strided_slice %401 {offsets = [0, 64], sizes = [8, 32], strides = [1, 1]} : vector<8x128xf32> to vector<8x32xf32>
    %405 = vector.extract_strided_slice %401 {offsets = [0, 96], sizes = [8, 32], strides = [1, 1]} : vector<8x128xf32> to vector<8x32xf32>
    %406 = arith.mulf %403, %356 : vector<8x32xf32>
    %407 = arith.mulf %402, %404 : vector<8x32xf32>
    %408 = arith.addf %406, %407 : vector<8x32xf32>
    %409 = math.tanh %408 : vector<8x32xf32>
    %410 = arith.mulf %405, %409 : vector<8x32xf32>
    %cst_57 = arith.constant dense<0.000000e+00> : vector<8x128xf32>
    %411 = tpu.matmul %392, %1, %cst_57 {dimension_numbers = #tpu.dot_dimension_numbers<[1], [0], [0], [1], [0, 0, 1, 1], [], []>} : vector<8x32xf32>, vector<32x128xf32>, vector<8x128xf32> -> vector<8x128xf32>
    %cst_58 = arith.constant dense<0.000000e+00> : vector<8x128xf32>
    %412 = tpu.matmul %376, %5, %cst_58 {dimension_numbers = #tpu.dot_dimension_numbers<[1], [0], [0], [1], [0, 0, 1, 1], [], []>} : vector<8x32xf32>, vector<32x128xf32>, vector<8x128xf32> -> vector<8x128xf32>
    %413 = arith.addf %411, %412 : vector<8x128xf32>
    %414 = vector.broadcast %6 : vector<1x128xf32> to vector<8x128xf32>
    %415 = arith.addf %413, %414 : vector<8x128xf32>
    %416 = arith.mulf %415, %17 : vector<8x128xf32>
    %417 = math.tanh %416 : vector<8x128xf32>
    %418 = arith.mulf %417, %17 : vector<8x128xf32>
    %419 = arith.addf %418, %20 : vector<8x128xf32>
    %420 = vector.extract_strided_slice %419 {offsets = [0, 0], sizes = [8, 32], strides = [1, 1]} : vector<8x128xf32> to vector<8x32xf32>
    %421 = vector.extract_strided_slice %419 {offsets = [0, 32], sizes = [8, 32], strides = [1, 1]} : vector<8x128xf32> to vector<8x32xf32>
    %422 = vector.extract_strided_slice %419 {offsets = [0, 64], sizes = [8, 32], strides = [1, 1]} : vector<8x128xf32> to vector<8x32xf32>
    %423 = vector.extract_strided_slice %419 {offsets = [0, 96], sizes = [8, 32], strides = [1, 1]} : vector<8x128xf32> to vector<8x32xf32>
    %424 = arith.mulf %421, %374 : vector<8x32xf32>
    %425 = arith.mulf %420, %422 : vector<8x32xf32>
    %426 = arith.addf %424, %425 : vector<8x32xf32>
    %427 = math.tanh %426 : vector<8x32xf32>
    %428 = arith.mulf %423, %427 : vector<8x32xf32>
    %cst_59 = arith.constant dense<0.000000e+00> : vector<8x128xf32>
    %429 = tpu.matmul %428, %2, %cst_59 {dimension_numbers = #tpu.dot_dimension_numbers<[1], [0], [0], [1], [0, 0, 1, 1], [], []>} : vector<8x32xf32>, vector<32x128xf32>, vector<8x128xf32> -> vector<8x128xf32>
    %cst_60 = arith.constant dense<0.000000e+00> : vector<8x128xf32>
    %430 = tpu.matmul %410, %7, %cst_60 {dimension_numbers = #tpu.dot_dimension_numbers<[1], [0], [0], [1], [0, 0, 1, 1], [], []>} : vector<8x32xf32>, vector<32x128xf32>, vector<8x128xf32> -> vector<8x128xf32>
    %431 = arith.addf %429, %430 : vector<8x128xf32>
    %432 = vector.broadcast %8 : vector<1x128xf32> to vector<8x128xf32>
    %433 = arith.addf %431, %432 : vector<8x128xf32>
    %434 = arith.mulf %433, %17 : vector<8x128xf32>
    %435 = math.tanh %434 : vector<8x128xf32>
    %436 = arith.mulf %435, %17 : vector<8x128xf32>
    %437 = arith.addf %436, %20 : vector<8x128xf32>
    %438 = vector.extract_strided_slice %437 {offsets = [0, 0], sizes = [8, 32], strides = [1, 1]} : vector<8x128xf32> to vector<8x32xf32>
    %439 = vector.extract_strided_slice %437 {offsets = [0, 32], sizes = [8, 32], strides = [1, 1]} : vector<8x128xf32> to vector<8x32xf32>
    %440 = vector.extract_strided_slice %437 {offsets = [0, 64], sizes = [8, 32], strides = [1, 1]} : vector<8x128xf32> to vector<8x32xf32>
    %441 = vector.extract_strided_slice %437 {offsets = [0, 96], sizes = [8, 32], strides = [1, 1]} : vector<8x128xf32> to vector<8x32xf32>
    %442 = arith.mulf %439, %408 : vector<8x32xf32>
    %443 = arith.mulf %438, %440 : vector<8x32xf32>
    %444 = arith.addf %442, %443 : vector<8x32xf32>
    %445 = math.tanh %444 : vector<8x32xf32>
    %446 = arith.mulf %441, %445 : vector<8x32xf32>
    %c208 = arith.constant 208 : index
    %c0_61 = arith.constant 0 : index
    %447 = vector.load %arg1[%c208, %c0_61] : memref<408x128xf32, #tpu.memory_space<vmem>>, vector<32x128xf32>
    %c240 = arith.constant 240 : index
    %c0_62 = arith.constant 0 : index
    %448 = vector.load %arg1[%c240, %c0_62] : memref<408x128xf32, #tpu.memory_space<vmem>>, vector<1x128xf32>
    %c248 = arith.constant 248 : index
    %c0_63 = arith.constant 0 : index
    %449 = vector.load %arg1[%c248, %c0_63] : memref<408x128xf32, #tpu.memory_space<vmem>>, vector<128x128xf32>
    %c376 = arith.constant 376 : index
    %c0_64 = arith.constant 0 : index
    %450 = vector.load %arg1[%c376, %c0_64] : memref<408x128xf32, #tpu.memory_space<vmem>>, vector<1x128xf32>
    %cst_65 = arith.constant dense<0.000000e+00> : vector<8x128xf32>
    %451 = tpu.matmul %446, %447, %cst_65 {dimension_numbers = #tpu.dot_dimension_numbers<[1], [0], [0], [1], [0, 0, 1, 1], [], []>} : vector<8x32xf32>, vector<32x128xf32>, vector<8x128xf32> -> vector<8x128xf32>
    %452 = vector.broadcast %448 : vector<1x128xf32> to vector<8x128xf32>
    %453 = arith.addf %451, %452 : vector<8x128xf32>
    %cst_66 = arith.constant 0.000000e+00 : f32
    %454 = vector.broadcast %cst_66 : f32 to vector<8x128xf32>
    %455 = arith.maximumf %453, %454 : vector<8x128xf32>
    %cst_67 = arith.constant dense<0.000000e+00> : vector<8x128xf32>
    %456 = tpu.matmul %455, %449, %cst_67 {dimension_numbers = #tpu.dot_dimension_numbers<[1], [0], [0], [1], [0, 0, 1, 1], [], []>} : vector<8x128xf32>, vector<128x128xf32>, vector<8x128xf32> -> vector<8x128xf32>
    %457 = vector.broadcast %450 : vector<1x128xf32> to vector<8x128xf32>
    %458 = arith.addf %456, %457 : vector<8x128xf32>
    %459 = arith.negf %458 : vector<8x128xf32>
    %460 = math.exp %459 : vector<8x128xf32>
    %cst_68 = arith.constant 1.000000e+00 : f32
    %461 = vector.broadcast %cst_68 : f32 to vector<8x128xf32>
    %462 = arith.addf %461, %460 : vector<8x128xf32>
    %463 = arith.divf %461, %462 : vector<8x128xf32>
    %c0_69 = arith.constant 0 : index
    %c0_70 = arith.constant 0 : index
    %464 = vector.load %arg2[%c0_69, %c0_70] : memref<8x128xf32, #tpu.memory_space<vmem>>, vector<8x128xf32>
    tpu.vector_store %arg2[%c0_69, %c0_70], %463 {strides = array<i32>} : memref<8x128xf32, #tpu.memory_space<vmem>>, vector<8x128xf32>,
    return
  }
}

</mosaic_0001>

<bundles_post_ra>
// kernel: tpu_custom_call.1
= control target key start
LH: loop header
LB: loop body
LE: loop exit
PB: predicated region body
PF: predicated region fallthrough
CT: control target
= control target key end

     0   :  { %7 = vsyncpa [#allocation3], 0  ;;  %s2503_s0 = inlined_call_operand.vmem [shape: f32[64,48], index: 0, kind: input, shape index: {}]   ;;  %s2504_s1 = inlined_call_operand.hbm [shape: f32[408,128], index: 1, kind: input, shape index: {}]   ;;  %s2505_s2 = inlined_call_operand.hbm [shape: f32[8,128], index: 2, kind: output, shape index: {}]  }
   0x1   :  { %8 = vsyncpa [#allocation4], 0  ;;  %s15_s11 = sshll.u32 %s2504_s1, 4  ;;  %s1926_s12 = smov [#allocation2]   ;;  %s16_s11 = int_to_ptr.hbm [resolvable:$true] %s15_s11 }
   0x2   :  { %s17_s13 = sshll.u32 %s1926_s12, 4  ;;  %s1927_s14 = smov 128   ;;  %s18_s13 = int_to_ptr.vmem [resolvable:$true] %s17_s13 }
   0x3   :  { %s1928_s15 = smov 8  }
   0x4   :  { %23 = dma.hbm_to_vmem [thread:$0]  %s16_s11, 6528, %s18_s13, [#allocation3], %s1927_s14, %s1927_s14, %s1928_s15  }
   0x5   :  { %1922 = dma.done.wait [#allocation3], 6528  }
   0x6   :  { %1923 = vsyncadd [#allocation3], 4294960768  ;;  %v33_v0 = vld [vmem:[#allocation2 + $0x28] sm:$0xff]  ;;  %v32_v1 = vld [vmem:[#allocation2 + $0x20] sm:$0xff]  ;;  %vm73_vm0 = vcmask 392192   ;;  %v1929_v11 = vmov 0.0   ;;  %v57_v12 = vlaneseq }
   0x7   :  { %108 = vmatpush.msra.mxu0 %v33_v0  ;;  %v1952_v2 = vld [vmem:[#allocation2 + $0x88] sm:$0xff]  ;;  %v31_v3 = vld [vmem:[#allocation2 + $0x18] sm:$0xff]  ;;  %v1955_v4 = vld [vmem:[#allocation2 + $0x80] sm:$0xff]  ;;  %v1930_v18 = vmov 0.5   ;;  %s1931_s17 = smov 64   ;;  %s1932_s18 = smov 32  }
   0x8   :  { %155 = vmatpush.msra.mxu1 %v1952_v2  ;;  %v1957_v5 = vld [vmem:[#allocation2 + $0x78] sm:$0xff]  ;;  %v30_v6 = vld [vmem:[#allocation2 + $0x10] sm:$0xff]  ;;  %v29_v8 = vld [vmem:[#allocation2 + $0x8] sm:$0xff]  ;;  %v58_v13 = vand.u32 127, %v57_v12  ;;  %vm139_vm4 = vcmask 261120   ;;  %s1685_s8 = sshll.u32 %s2505_s2, 4  ;;  %s1686_s8 = int_to_ptr.hbm [resolvable:$true] %s1685_s8 }
   0x9   :  { %109 = vmatpush.msra.mxu0 %v32_v1  ;;  %v1960_v7 = vld [vmem:[#allocation2 + $0x70] sm:$0xff]  ;;  %v28_v9 = vld [vmem:[#allocation2] sm:$0xff]  ;;  %v1989_v32 = vld [vmem:[#allocation2 + $0xa8] sm:$0xff] }
   0xa   :  { %156 = vmatpush.msra.mxu1 %v1955_v4  ;;  %v64_v10 = vld [vmem:[%s2503_s0] sm:$0xff]  ;;  %vm59_vm1 = vcmp.ge.s32.totalorder %v58_v13, 64  ;;  %vm60_vm2 = vcmp.lt.s32.totalorder %v58_v13, 96  ;;  %197 = vmatpush.msra.mxu3 %v1989_v32  ;;  %v1994_v34 = vld [vmem:[#allocation2 + $0x48] sm:$0xff]  ;;  %v1997_v35 = vld [vmem:[#allocation2 + $0x98] sm:$0xff] }
   0xb   :  { %110 = vmatpush.msra.mxu0 %v31_v3  ;;  %v1973_v14 = vld [vmem:[#allocation2 + $0x180] ss:$0 sm:$0xff]  ;;  %vm61_vm3 = vmand %vm59_vm1, %vm60_vm2  ;;  %v65_v36 = vld [vmem:[%s2503_s0 + $0x8] sm:$0xff]  ;;  %400 = vmatpush.msra.mxu2 %v1994_v34 }
   0xc   :  { %157 = vmatpush.msra.mxu1 %v1957_v5  ;;  %v1976_v19 = vsel %vm61_vm3, 1.0, %v1930_v18  ;;  %v1979_v23 = vsel %vm61_vm3, 0.0, %v1930_v18  ;;  %v1991_v33 = vld [vmem:[#allocation2 + $0xa0] sm:$0xff]  ;;  %v2007_v38 = vld [vmem:[#allocation2 + $0x90] sm:$0xff]  ;;  %v2012_v39 = vld [vmem:[#allocation2 + $0x38] sm:$0xff] }
   0xd   :  { %111 = vmatpush.msra.mxu0 %v30_v6  ;;  %198 = vmatpush.msra.mxu3 %v1991_v33  ;;  %v2004_v37 = vld [vmem:[#allocation2 + $0x40] sm:$0xff]  ;;  %v2017_v40 = vld [vmem:[#allocation2 + $0x30] sm:$0xff]  ;;  %v2031_v50 = vld [vmem:[#allocation2 + $0x188] ss:$0 sm:$0xff] }
   0xe   :  { %158 = vmatpush.msra.mxu1 %v1960_v7  ;;  %401 = vmatpush.msra.mxu2 %v2004_v37  ;;  %v66_v18 = vld [vmem:[%s2503_s0 + $0x10] sm:$0xff] }
   0xf   :  { %112 = vmatpush.msra.mxu0 %v29_v8  ;;  %159 = vmatmul.f32.vlgmr.msra.gmra.mxu1 %v1929_v11 }
  0x10   :  { %265 = vmatpush.msrb.mxu1 %v1952_v2  ;;  %199 = vmatpush.msra.mxu3 %v1997_v35 }
  0x11   :  { %113 = vmatpush.msra.mxu0 %v28_v9  ;;  %402 = vmatpush.msra.mxu2 %v2012_v39 }
  0x12   :  { %1695 = vmatmul.msk.f32.vlgmr.msra.gmra.mxu0 %vm73_vm0, %v64_v10  ;;  %266 = vmatpush.msrb.mxu1 %v1955_v4 }
  0x13   :  { %200 = vmatpush.msra.mxu3 %v2007_v38  ;;  %403 = vmatpush.msra.mxu2 %v2017_v40 }
  0x14   :  { %267 = vmatpush.msrb.mxu1 %v1957_v5  ;;  %201 = vmatmul.f32.vlgmr.msra.gmra.mxu3 %v1929_v11 }
  0x15   :  { %222 = vmatpush.msrb.mxu3 %v1994_v34 }
  0x16   :  { %268 = vmatpush.msrb.mxu1 %v1960_v7 }
  0x17   :  { %223 = vmatpush.msrb.mxu3 %v2004_v37 }
  0x18   :  { %375 = vmatpush.msra.mxu1 %v1989_v32 }
  0x19   :  { %224 = vmatpush.msrb.mxu3 %v2012_v39 }
  0x1a   :  { %1696 = vmatmul.msk.f32.gmra.mxu0 %vm73_vm0, %v65_v36  ;;  %376 = vmatpush.msra.mxu1 %v1991_v33  ;;  %v71_v36 = vld [vmem:[%s2503_s0 + $0x38] sm:$0xff] }
  0x1b   :  { %225 = vmatpush.msrb.mxu3 %v2017_v40 }
  0x1c   :  { %377 = vmatpush.msra.mxu1 %v1997_v35 }
  0x1e   :  { %378 = vmatpush.msra.mxu1 %v2007_v38 }
  0x22   :  { %1697 = vmatmul.msk.f32.gmra.mxu0 %vm73_vm0, %v66_v18 }
  0x8c   :  { %v160_v16 = vpop.f32.mrf.mxu1 }
  0x8f   :  { %v115_v15 = vpop.f32.mrf.mxu0 }
  0x90   :  { %v116_v17 = vadd.f32 %v1973_v14, %v115_v15 }
  0x92   :  { %v163_v20 = vadd.f32 %v160_v16, %v116_v17  ;;  %v2053_v17 = vld [vmem:[#allocation2 + $0xc8] sm:$0xff] }
  0x93   :  { %307 = vmatpush.msrb.mxu0 %v2053_v17 }
  0x94   :  { %v164_v21 = vmul.f32 %v163_v20, %v1976_v19  ;;  %v2058_v20 = vld [vmem:[#allocation2 + $0xc0] sm:$0xff] }
  0x95   :  { %308 = vmatpush.msrb.mxu0 %v2058_v20 }
  0x96   :  { %1755 = vtanh.f32 %v164_v21  ;;  %v2063_v21 = vld [vmem:[#allocation2 + $0xb8] sm:$0xff] }
  0x97   :  { %v118_v44 = vpop.f32.mrf.mxu0  ;;  %v202_v45 = vpop.f32.mrf.mxu3  ;;  %309 = vmatpush.msrb.mxu0 %v2063_v21 }
  0x98   :  { %v119_v46 = vadd.f32 %v1973_v14, %v118_v44 }
  0x9c   :  { %v1756_v22 = vpop.eup %1755 }
  0x9d   :  { %v166_v24 = vmul.f32 %v1756_v22, %v1976_v19  ;;  %v2067_v22 = vld [vmem:[#allocation2 + $0xb0] sm:$0xff] }
  0x9e   :  { %310 = vmatpush.msrb.mxu0 %v2067_v22 }
  0x9f   :  { %v167_v25 = vadd.f32 %v166_v24, %v1979_v23  ;;  %v67_v24 = vld [vmem:[%s2503_s0 + $0x18] sm:$0xff]  ;;  %v121_v44 = vpop.f32.mrf.mxu0 }
  0xa0   :  { %1124 = vmatpush.msra.mxu0 %v1994_v34 }
  0xa1   :  { %170 = vrot.lane.b32.xlu0 %v167_v25, %s1931_s17  ;;  %v168_v28 = vmul.f32 0.0, %v167_v25  ;;  %1698 = vmatmul.msk.f32.gmra.mxu0 %vm73_vm0, %v67_v24 }
  0xa2   :  { %1125 = vmatpush.msra.mxu0 %v2004_v37 }
  0xa4   :  { %1126 = vmatpush.msra.mxu0 %v2012_v39 }
  0xa6   :  { %1127 = vmatpush.msra.mxu0 %v2017_v40 }
 0x113   :  { %v171_v26 = vpop.permute.xlu0 %170 }
 0x114   :  { %v173_v27 = vmul.f32 %v171_v26, %v167_v25  ;;  %v69_v26 = vld [vmem:[%s2503_s0 + $0x28] sm:$0xff] }
 0x116   :  { %175 = vrot.lane.b32.xlu0 %v173_v27, %s1932_s18 }
 0x188   :  { %v176_v29 = vpop.permute.xlu0 %175 }
 0x189   :  { %v1985_v30 = vadd.f32 %v176_v29, %v168_v28  ;;  %v70_v29 = vld [vmem:[%s2503_s0 + $0x30] sm:$0xff] }
 0x18b   :  { %1757 = vtanh.f32 %v1985_v30 }
 0x191   :  { %v1758_v31 = vpop.eup %1757 }
 0x192   :  { %181 = vrot.lane.b32.xlu1 %v1758_v31, %s1931_s17  ;;  %v2097_v31 = vld [vmem:[#allocation2 + $0x60] sm:$0xff] }
 0x204   :  { %v182_v41 = vpop.permute.xlu1 %181 }
 0x205   :  { %v184_v42 = vmul.f32 %v182_v41, %v167_v25  ;;  %v68_v25 = vld [vmem:[%s2503_s0 + $0x20] sm:$0xff]  ;;  %v2103_v41 = vld [vmem:[#allocation2 + $0x58] sm:$0xff]  ;;  %s1933_s0 = smov [#allocation5]  }
 0x206   :  { %1699 = vmatmul.msk.f32.gmra.mxu0 %vm73_vm0, %v68_v25  ;;  %s1683_s5 = sshll.u32 %s1933_s0, 4  ;;  %s1684_s5 = int_to_ptr.vmem [resolvable:$true] %s1683_s5 }
 0x207   :  { %206 = vrot.lane.b32.xlu1 %v184_v42, %s1932_s18  ;;  %v2108_v42 = vld [vmem:[#allocation2 + $0x50] sm:$0xff] }
 0x20e   :  { %1700 = vmatmul.msk.f32.gmra.mxu0 %vm73_vm0, %v69_v26 }
 0x216   :  { %1701 = vmatmul.msk.f32.gmra.mxu0 %vm73_vm0, %v70_v29 }
 0x21e   :  { %1702 = vmatmul.msk.f32.gmra.mxu0 %vm73_vm0, %v71_v36 }
 0x226   :  { %311 = vmatmul.f32.vlgmr.msrb.gmra.mxu0 %v1929_v11 }
 0x227   :  { %1280 = vmatpush.msrb.mxu0 %v1989_v32 }
 0x229   :  { %1281 = vmatpush.msrb.mxu0 %v1991_v33 }
 0x22b   :  { %1282 = vmatpush.msrb.mxu0 %v1997_v35 }
 0x22d   :  { %1283 = vmatpush.msrb.mxu0 %v2007_v38 }
 0x279   :  { %v207_v43 = vpop.permute.xlu1 %206 }
 0x27a   :  { %1703 = vmatmul.msk.f32.vlgmr.msrb.gmra.mxu3 %vm139_vm4, %v207_v43  ;;  %1704 = vmatmul.msk.f32.vlgmr.msrb.gmra.mxu1 %vm139_vm4, %v207_v43 }
 0x27b   :  { %489 = vmatpush.msrb.mxu1 %v2053_v17 }
 0x27d   :  { %490 = vmatpush.msrb.mxu1 %v2058_v20 }
 0x27f   :  { %491 = vmatpush.msrb.mxu1 %v2063_v21 }
 0x281   :  { %492 = vmatpush.msrb.mxu1 %v2067_v22 }
 0x2f7   :  { %v270_v47 = vpop.f32.mrf.mxu1 }
 0x2f8   :  { %v273_v48 = vadd.f32 %v270_v47, %v119_v46 }
 0x2fa   :  { %v274_v49 = vmul.f32 %v273_v48, %v1976_v19 }
 0x2fc   :  { %1759 = vtanh.f32 %v274_v49 }
 0x2fd   :  { %v227_v51 = vpop.f32.mrf.mxu3 }
 0x2fe   :  { %v228_v52 = vadd.f32 %v227_v51, %v202_v45  ;;  %v2143_v45 = vpop.f32.mrf.mxu0 }
 0x300   :  { %v231_v53 = vadd.f32 %v2031_v50, %v228_v52 }
 0x302   :  { %v1760_v54 = vpop.eup %1759  ;;  %v232_v55 = vmul.f32 %v231_v53, %v1976_v19 }
 0x303   :  { %v276_v56 = vmul.f32 %v1760_v54, %v1976_v19 }
 0x304   :  { %1761 = vtanh.f32 %v232_v55 }
 0x305   :  { %v277_v57 = vadd.f32 %v276_v56, %v1979_v23 }
 0x306   :  { %v2145_v46 = vpop.f32.mrf.mxu0 }
 0x307   :  { %280 = vrot.lane.b32.xlu2 %v277_v57, %s1931_s17  ;;  %v278_v1 = vmul.f32 %v277_v57, %v1985_v30  ;;  %v2094_v30 = vld [vmem:[#allocation2 + $0x68] sm:$0xff] }
 0x308   :  { %332 = vmatpush.msra.mxu3 %v2094_v30  ;;  %514 = vmatpush.msrb.mxu2 %v2094_v30 }
 0x30a   :  { %v1762_v58 = vpop.eup %1761  ;;  %333 = vmatpush.msra.mxu3 %v2097_v31  ;;  %515 = vmatpush.msrb.mxu2 %v2097_v31 }
 0x30b   :  { %v234_v59 = vmul.f32 %v1762_v58, %v1976_v19 }
 0x30c   :  { %334 = vmatpush.msra.mxu3 %v2103_v41  ;;  %516 = vmatpush.msrb.mxu2 %v2103_v41 }
 0x30d   :  { %v235_v60 = vadd.f32 %v234_v59, %v1979_v23 }
 0x30e   :  { %335 = vmatpush.msra.mxu3 %v2108_v42  ;;  %517 = vmatpush.msrb.mxu2 %v2108_v42  ;;  %v2147_v47 = vpop.f32.mrf.mxu0 }
 0x30f   :  { %238 = vrot.lane.b32.xlu2 %v235_v60, %s1931_s17  ;;  %v236_v8 = vmul.f32 0.0, %v235_v60 }
 0x310   :  { %442 = vmatpush.msrb.mxu3 %v1952_v2 }
 0x312   :  { %443 = vmatpush.msrb.mxu3 %v1955_v4 }
 0x314   :  { %444 = vmatpush.msrb.mxu3 %v1957_v5 }
 0x316   :  { %445 = vmatpush.msrb.mxu3 %v1960_v7  ;;  %v2149_v48 = vpop.f32.mrf.mxu0 }
 0x31e   :  { %v2151_v49 = vpop.f32.mrf.mxu0 }
 0x326   :  { %v312_v55 = vpop.f32.mrf.mxu0 }
 0x361   :  { %v281_v61 = vpop.permute.xlu2 %280 }
 0x362   :  { %v283_v62 = vmul.f32 %v281_v61, %v277_v57 }
 0x364   :  { %285 = vrot.lane.b32.xlu0 %v283_v62, %s1932_s18 }
 0x369   :  { %v239_v63 = vpop.permute.xlu2 %238 }
 0x36a   :  { %v241_v0 = vmul.f32 %v239_v63, %v235_v60  ;;  %v122_v63 = vadd.f32 %v1973_v14, %v121_v44 }
 0x36c   :  { %243 = vrot.lane.b32.xlu1 %v241_v0, %s1932_s18 }
 0x3d6   :  { %v286_v3 = vpop.permute.xlu0 %285 }
 0x3d7   :  { %v2044_v6 = vadd.f32 %v286_v3, %v278_v1 }
 0x3d9   :  { %1763 = vtanh.f32 %v2044_v6 }
 0x3de   :  { %v244_v9 = vpop.permute.xlu1 %243 }
 0x3df   :  { %v1764_v10 = vpop.eup %1763  ;;  %v2047_v12 = vadd.f32 %v244_v9, %v236_v8 }
 0x3e0   :  { %291 = vrot.lane.b32.xlu2 %v1764_v10, %s1931_s17 }
 0x3e1   :  { %1765 = vtanh.f32 %v2047_v12 }
 0x3e7   :  { %v1766_v13 = vpop.eup %1765 }
 0x3e8   :  { %249 = vrot.lane.b32.xlu0 %v1766_v13, %s1931_s17 }
 0x43a   :  { %v292_v15 = vpop.permute.xlu2 %291 }
 0x43b   :  { %v294_v16 = vmul.f32 %v292_v15, %v277_v57  ;;  %v2155_v57 = vld [vmem:[#allocation2 + $0x190] ss:$0 sm:$0xff] }
 0x43d   :  { %384 = vrot.lane.b32.xlu1 %v294_v16, %s1932_s18 }
 0x45a   :  { %v250_v27 = vpop.permute.xlu0 %249 }
 0x45b   :  { %v252_v28 = vmul.f32 %v250_v27, %v235_v60 }
 0x45d   :  { %316 = vrot.lane.b32.xlu2 %v252_v28, %s1932_s18 }
 0x4af   :  { %v385_v43 = vpop.permute.xlu1 %384 }
 0x4b0   :  { %1707 = vmatmul.msk.f32.vlgmr.msra.gmra.mxu2 %vm139_vm4, %v385_v43 }
 0x4b1   :  { %623 = vmatpush.msra.mxu2 %v1952_v2 }
 0x4b3   :  { %624 = vmatpush.msra.mxu2 %v1955_v4 }
 0x4b5   :  { %625 = vmatpush.msra.mxu2 %v1957_v5 }
 0x4b7   :  { %v317_v11 = vpop.permute.xlu2 %316  ;;  %626 = vmatpush.msra.mxu2 %v1960_v7 }
 0x4b8   :  { %1705 = vmatmul.msk.f32.vlgmr.msra.gmra.mxu3 %vm139_vm4, %v317_v11  ;;  %1706 = vmatmul.msk.f32.vlgmr.msra.gmra.mxu1 %vm139_vm4, %v317_v11 }
 0x4b9   :  { %556 = vmatpush.msra.mxu3 %v1989_v32  ;;  %581 = vmatpush.msra.mxu1 %v1994_v34 }
 0x4bb   :  { %557 = vmatpush.msra.mxu3 %v1991_v33  ;;  %582 = vmatpush.msra.mxu1 %v2004_v37 }
 0x4bd   :  { %558 = vmatpush.msra.mxu3 %v1997_v35  ;;  %583 = vmatpush.msra.mxu1 %v2012_v39 }
 0x4bf   :  { %559 = vmatpush.msra.mxu3 %v2007_v38  ;;  %584 = vmatpush.msra.mxu1 %v2017_v40 }
 0x4c0   :  { %1708 = vmatmul.msk.f32.vlgmr.msrb.gmra.mxu3 %vm139_vm4, %v385_v43 }
 0x4c1   :  { %670 = vmatpush.msrb.mxu3 %v2053_v17 }
 0x4c3   :  { %671 = vmatpush.msrb.mxu3 %v2058_v20 }
 0x4c5   :  { %672 = vmatpush.msrb.mxu3 %v2063_v21 }
 0x4c7   :  { %673 = vmatpush.msrb.mxu3 %v2067_v22 }
 0x533   :  { %v405_v51 = vpop.f32.mrf.mxu2 }
 0x535   :  { %v380_v52 = vpop.f32.mrf.mxu1 }
 0x536   :  { %v406_v53 = vadd.f32 %v405_v51, %v380_v52 }
 0x538   :  { %v408_v54 = vadd.f32 %v2031_v50, %v406_v53 }
 0x53a   :  { %v409_v56 = vmul.f32 %v408_v54, %v1976_v19 }
 0x53b   :  { %v337_v58 = vpop.f32.mrf.mxu3 }
 0x53c   :  { %1767 = vtanh.f32 %v409_v56  ;;  %v338_v59 = vadd.f32 %v337_v58, %v312_v55 }
 0x53e   :  { %v341_v60 = vadd.f32 %v2155_v57, %v338_v59 }
 0x540   :  { %v342_v61 = vmul.f32 %v341_v60, %v1976_v19 }
 0x542   :  { %v1768_v62 = vpop.eup %1767  ;;  %1769 = vtanh.f32 %v342_v61 }
 0x543   :  { %v447_v0 = vpop.f32.mrf.mxu3  ;;  %v411_v1 = vmul.f32 %v1768_v62, %v1976_v19 }
 0x544   :  { %v450_v3 = vadd.f32 %v447_v0, %v122_v63 }
 0x545   :  { %v412_v8 = vadd.f32 %v411_v1, %v1979_v23 }
 0x546   :  { %v451_v9 = vmul.f32 %v450_v3, %v1976_v19 }
 0x547   :  { %415 = vrot.lane.b32.xlu0 %v412_v8, %s1931_s17  ;;  %v413_v52 = vmul.f32 %v412_v8, %v2047_v12 }
 0x548   :  { %v1770_v10 = vpop.eup %1769  ;;  %1771 = vtanh.f32 %v451_v9 }
 0x549   :  { %v344_v13 = vmul.f32 %v1770_v10, %v1976_v19 }
 0x54b   :  { %v345_v15 = vadd.f32 %v344_v13, %v1979_v23 }
 0x54d   :  { %348 = vrot.lane.b32.xlu1 %v345_v15, %s1931_s17  ;;  %v346_v55 = vmul.f32 0.0, %v345_v15 }
 0x54e   :  { %v1772_v16 = vpop.eup %1771 }
 0x54f   :  { %v453_v18 = vmul.f32 %v1772_v16, %v1976_v19 }
 0x551   :  { %v454_v24 = vadd.f32 %v453_v18, %v1979_v23  ;;  %v125_v18 = vadd.f32 %v1973_v14, %v2143_v45 }
 0x553   :  { %457 = vrot.lane.b32.xlu2 %v454_v24, %s1931_s17  ;;  %v455_v43 = vmul.f32 %v454_v24, %v2044_v6 }
 0x5ad   :  { %v458_v25 = vpop.permute.xlu2 %457 }
 0x5ae   :  { %v460_v26 = vmul.f32 %v458_v25, %v454_v24 }
 0x5b0   :  { %462 = vrot.lane.b32.xlu2 %v460_v26, %s1932_s18 }
 0x5b9   :  { %v416_v27 = vpop.permute.xlu0 %415 }
 0x5ba   :  { %v418_v28 = vmul.f32 %v416_v27, %v412_v8 }
 0x5bc   :  { %420 = vrot.lane.b32.xlu0 %v418_v28, %s1932_s18 }
 0x5bf   :  { %v349_v29 = vpop.permute.xlu1 %348 }
 0x5c0   :  { %v351_v36 = vmul.f32 %v349_v29, %v345_v15 }
 0x5c2   :  { %353 = vrot.lane.b32.xlu1 %v351_v36, %s1932_s18 }
 0x60a   :  { %v463_v11 = vpop.permute.xlu2 %462 }
 0x60b   :  { %v2174_v44 = vadd.f32 %v463_v11, %v455_v43 }
 0x60d   :  { %1773 = vtanh.f32 %v2174_v44 }
 0x613   :  { %v1774_v51 = vpop.eup %1773 }
 0x614   :  { %468 = vrot.lane.b32.xlu2 %v1774_v51, %s1931_s17 }
 0x62e   :  { %v421_v53 = vpop.permute.xlu0 %420 }
 0x62f   :  { %v2179_v54 = vadd.f32 %v421_v53, %v413_v52 }
 0x631   :  { %1775 = vtanh.f32 %v2179_v54 }
 0x634   :  { %v354_v56 = vpop.permute.xlu1 %353 }
 0x635   :  { %v2182_v58 = vadd.f32 %v354_v56, %v346_v55 }
 0x637   :  { %v1776_v6 = vpop.eup %1775  ;;  %1777 = vtanh.f32 %v2182_v58 }
 0x638   :  { %426 = vrot.lane.b32.xlu0 %v1776_v6, %s1931_s17 }
 0x63d   :  { %v1778_v59 = vpop.eup %1777 }
 0x63e   :  { %359 = vrot.lane.b32.xlu1 %v1778_v59, %s1931_s17 }
 0x66e   :  { %v469_v60 = vpop.permute.xlu2 %468 }
 0x66f   :  { %v471_v61 = vmul.f32 %v469_v60, %v454_v24 }
 0x671   :  { %565 = vrot.lane.b32.xlu2 %v471_v61, %s1932_s18 }
 0x6aa   :  { %v427_v12 = vpop.permute.xlu0 %426 }
 0x6ab   :  { %v429_v62 = vmul.f32 %v427_v12, %v412_v8 }
 0x6ad   :  { %498 = vrot.lane.b32.xlu0 %v429_v62, %s1932_s18 }
 0x6b0   :  { %v360_v63 = vpop.permute.xlu1 %359 }
 0x6b1   :  { %v362_v0 = vmul.f32 %v360_v63, %v345_v15 }
 0x6b3   :  { %473 = vrot.lane.b32.xlu1 %v362_v0, %s1932_s18 }
 0x6cb   :  { %v566_v8 = vpop.permute.xlu2 %565 }
 0x71f   :  { %v499_v1 = vpop.permute.xlu0 %498 }
 0x720   :  { %1710 = vmatmul.msk.f32.vlgmr.msrb.gmra.mxu2 %vm139_vm4, %v499_v1  ;;  %1711 = vmatmul.msk.f32.vlgmr.msra.gmra.mxu3 %vm139_vm4, %v499_v1 }
 0x721   :  { %737 = vmatpush.msrb.mxu2 %v1989_v32  ;;  %762 = vmatpush.msra.mxu3 %v1994_v34 }
 0x723   :  { %738 = vmatpush.msrb.mxu2 %v1991_v33  ;;  %763 = vmatpush.msra.mxu3 %v2004_v37 }
 0x725   :  { %v474_v3 = vpop.permute.xlu1 %473  ;;  %739 = vmatpush.msrb.mxu2 %v1997_v35  ;;  %764 = vmatpush.msra.mxu3 %v2012_v39 }
 0x726   :  { %1709 = vmatmul.msk.f32.vlgmr.msrb.gmra.mxu1 %vm139_vm4, %v474_v3 }
 0x727   :  { %695 = vmatpush.msrb.mxu1 %v2094_v30  ;;  %740 = vmatpush.msrb.mxu2 %v2007_v38 }
 0x728   :  { %1713 = vmatmul.msk.f32.vlgmr.msra.gmra.mxu2 %vm139_vm4, %v566_v8  ;;  %765 = vmatpush.msra.mxu3 %v2017_v40 }
 0x729   :  { %696 = vmatpush.msrb.mxu1 %v2097_v31  ;;  %851 = vmatpush.msra.mxu2 %v2053_v17 }
 0x72b   :  { %697 = vmatpush.msrb.mxu1 %v2103_v41  ;;  %852 = vmatpush.msra.mxu2 %v2058_v20 }
 0x72d   :  { %698 = vmatpush.msrb.mxu1 %v2108_v42  ;;  %853 = vmatpush.msra.mxu2 %v2063_v21 }
 0x72e   :  { %1712 = vmatmul.msk.f32.vlgmr.msra.gmra.mxu1 %vm139_vm4, %v566_v8 }
 0x72f   :  { %804 = vmatpush.msra.mxu1 %v1952_v2  ;;  %854 = vmatpush.msra.mxu2 %v2067_v22 }
 0x731   :  { %805 = vmatpush.msra.mxu1 %v1955_v4 }
 0x733   :  { %806 = vmatpush.msra.mxu1 %v1957_v5 }
 0x735   :  { %807 = vmatpush.msra.mxu1 %v1960_v7 }
 0x7a3   :  { %v494_v9 = vpop.f32.mrf.mxu1  ;;  %v519_v10 = vpop.f32.mrf.mxu2 }
 0x7a4   :  { %v520_v13 = vadd.f32 %v519_v10, %v494_v9  ;;  %v561_v24 = vpop.f32.mrf.mxu3 }
 0x7a6   :  { %v522_v15 = vadd.f32 %v2155_v57, %v520_v13 }
 0x7a8   :  { %v523_v16 = vmul.f32 %v522_v15, %v1976_v19 }
 0x7aa   :  { %1779 = vtanh.f32 %v523_v16 }
 0x7ab   :  { %v586_v25 = vpop.f32.mrf.mxu1  ;;  %v628_v26 = vpop.f32.mrf.mxu2 }
 0x7ac   :  { %v587_v27 = vadd.f32 %v586_v25, %v561_v24  ;;  %v631_v28 = vadd.f32 %v628_v26, %v125_v18 }
 0x7ae   :  { %v589_v29 = vadd.f32 %v2031_v50, %v587_v27  ;;  %v632_v36 = vmul.f32 %v631_v28, %v1976_v19 }
 0x7b0   :  { %v1780_v43 = vpop.eup %1779  ;;  %v590_v11 = vmul.f32 %v589_v29, %v1976_v19  ;;  %1781 = vtanh.f32 %v632_v36 }
 0x7b1   :  { %v525_v51 = vmul.f32 %v1780_v43, %v1976_v19 }
 0x7b2   :  { %1783 = vtanh.f32 %v590_v11 }
 0x7b3   :  { %v526_v52 = vadd.f32 %v525_v51, %v1979_v23 }
 0x7b5   :  { %529 = vrot.lane.b32.xlu0 %v526_v52, %s1931_s17  ;;  %v527_v10 = vmul.f32 %v526_v52, %v2182_v58 }
 0x7b6   :  { %v1782_v45 = vpop.eup %1781 }
 0x7b7   :  { %v634_v53 = vmul.f32 %v1782_v45, %v1976_v19 }
 0x7b8   :  { %v1784_v55 = vpop.eup %1783 }
 0x7b9   :  { %v635_v56 = vadd.f32 %v634_v53, %v1979_v23  ;;  %v592_v6 = vmul.f32 %v1784_v55, %v1976_v19 }
 0x7bb   :  { %638 = vrot.lane.b32.xlu2 %v635_v56, %s1931_s17  ;;  %v593_v59 = vadd.f32 %v592_v6, %v1979_v23  ;;  %v636_v1 = vmul.f32 %v635_v56, %v2174_v44  ;;  %v128_v6 = vadd.f32 %v1973_v14, %v2145_v46 }
 0x7bd   :  { %596 = vrot.lane.b32.xlu1 %v593_v59, %s1931_s17  ;;  %v594_v16 = vmul.f32 %v593_v59, %v2179_v54 }
 0x815   :  { %v639_v60 = vpop.permute.xlu2 %638 }
 0x816   :  { %v641_v61 = vmul.f32 %v639_v60, %v635_v56 }
 0x818   :  { %643 = vrot.lane.b32.xlu2 %v641_v61, %s1932_s18 }
 0x827   :  { %v530_v12 = vpop.permute.xlu0 %529 }
 0x828   :  { %v532_v62 = vmul.f32 %v530_v12, %v526_v52 }
 0x82a   :  { %534 = vrot.lane.b32.xlu0 %v532_v62, %s1932_s18 }
 0x82f   :  { %v597_v63 = vpop.permute.xlu1 %596 }
 0x830   :  { %v599_v0 = vmul.f32 %v597_v63, %v593_v59 }
 0x832   :  { %601 = vrot.lane.b32.xlu1 %v599_v0, %s1932_s18 }
 0x872   :  { %v644_v3 = vpop.permute.xlu2 %643 }
 0x873   :  { %v2235_v8 = vadd.f32 %v644_v3, %v636_v1 }
 0x875   :  { %1785 = vtanh.f32 %v2235_v8 }
 0x87b   :  { %v1786_v9 = vpop.eup %1785 }
 0x87c   :  { %649 = vrot.lane.b32.xlu2 %v1786_v9, %s1931_s17 }
 0x89c   :  { %v535_v13 = vpop.permute.xlu0 %534 }
 0x89d   :  { %v2240_v15 = vadd.f32 %v535_v13, %v527_v10 }
 0x89f   :  { %1787 = vtanh.f32 %v2240_v15 }
 0x8a4   :  { %v602_v18 = vpop.permute.xlu1 %601 }
 0x8a5   :  { %v1788_v24 = vpop.eup %1787  ;;  %v2244_v44 = vadd.f32 %v602_v18, %v594_v16 }
 0x8a6   :  { %540 = vrot.lane.b32.xlu0 %v1788_v24, %s1931_s17 }
 0x8a7   :  { %1789 = vtanh.f32 %v2244_v44 }
 0x8ad   :  { %v1790_v25 = vpop.eup %1789 }
 0x8ae   :  { %607 = vrot.lane.b32.xlu1 %v1790_v25, %s1931_s17 }
 0x8d6   :  { %v650_v26 = vpop.permute.xlu2 %649 }
 0x8d7   :  { %v652_v58 = vmul.f32 %v650_v26, %v635_v56 }
 0x8d9   :  { %746 = vrot.lane.b32.xlu2 %v652_v58, %s1932_s18 }
 0x918   :  { %v541_v27 = vpop.permute.xlu0 %540 }
 0x919   :  { %v543_v28 = vmul.f32 %v541_v27, %v526_v52 }
 0x91b   :  { %654 = vrot.lane.b32.xlu0 %v543_v28, %s1932_s18 }
 0x920   :  { %v608_v54 = vpop.permute.xlu1 %607 }
 0x921   :  { %v610_v29 = vmul.f32 %v608_v54, %v593_v59 }
 0x923   :  { %679 = vrot.lane.b32.xlu1 %v610_v29, %s1932_s18 }
 0x933   :  { %v747_v11 = vpop.permute.xlu2 %746 }
 0x98d   :  { %v655_v36 = vpop.permute.xlu0 %654 }
 0x98e   :  { %1714 = vmatmul.msk.f32.vlgmr.msrb.gmra.mxu3 %vm139_vm4, %v655_v36 }
 0x98f   :  { %876 = vmatpush.msrb.mxu3 %v2094_v30 }
 0x991   :  { %877 = vmatpush.msrb.mxu3 %v2097_v31 }
 0x993   :  { %878 = vmatpush.msrb.mxu3 %v2103_v41 }
 0x995   :  { %v680_v43 = vpop.permute.xlu1 %679  ;;  %879 = vmatpush.msrb.mxu3 %v2108_v42 }
 0x996   :  { %1715 = vmatmul.msk.f32.vlgmr.msrb.gmra.mxu1 %vm139_vm4, %v680_v43  ;;  %1716 = vmatmul.msk.f32.vlgmr.msrb.gmra.mxu2 %vm139_vm4, %v680_v43 }
 0x997   :  { %1717 = vmatmul.msk.f32.vlgmr.msra.gmra.mxu3 %vm139_vm4, %v747_v11  ;;  %918 = vmatpush.msrb.mxu1 %v1989_v32 }
 0x998   :  { %943 = vmatpush.msrb.mxu2 %v1994_v34  ;;  %985 = vmatpush.msra.mxu3 %v1952_v2 }
 0x999   :  { %919 = vmatpush.msrb.mxu1 %v1991_v33 }
 0x99a   :  { %944 = vmatpush.msrb.mxu2 %v2004_v37  ;;  %986 = vmatpush.msra.mxu3 %v1955_v4 }
 0x99b   :  { %920 = vmatpush.msrb.mxu1 %v1997_v35 }
 0x99c   :  { %945 = vmatpush.msrb.mxu2 %v2012_v39  ;;  %987 = vmatpush.msra.mxu3 %v1957_v5 }
 0x99d   :  { %921 = vmatpush.msrb.mxu1 %v2007_v38 }
 0x99e   :  { %1718 = vmatmul.msk.f32.vlgmr.msra.gmra.mxu1 %vm139_vm4, %v747_v11  ;;  %946 = vmatpush.msrb.mxu2 %v2017_v40 }
 0x99f   :  { %988 = vmatpush.msra.mxu3 %v1960_v7  ;;  %1032 = vmatpush.msra.mxu1 %v2053_v17 }
 0x9a1   :  { %1033 = vmatpush.msra.mxu1 %v2058_v20 }
 0x9a3   :  { %1034 = vmatpush.msra.mxu1 %v2063_v21 }
 0x9a5   :  { %1035 = vmatpush.msra.mxu1 %v2067_v22 }
 0xa11   :  { %v675_v51 = vpop.f32.mrf.mxu3 }
 0xa13   :  { %v700_v52 = vpop.f32.mrf.mxu1 }
 0xa14   :  { %v701_v45 = vadd.f32 %v700_v52, %v675_v51 }
 0xa16   :  { %v703_v53 = vadd.f32 %v2155_v57, %v701_v45 }
 0xa18   :  { %v704_v55 = vmul.f32 %v703_v53, %v1976_v19 }
 0xa19   :  { %v742_v56 = vpop.f32.mrf.mxu2 }
 0xa1a   :  { %1791 = vtanh.f32 %v704_v55  ;;  %v767_v59 = vpop.f32.mrf.mxu3 }
 0xa1b   :  { %v768_v60 = vadd.f32 %v767_v59, %v742_v56  ;;  %v809_v61 = vpop.f32.mrf.mxu1 }
 0xa1c   :  { %v812_v12 = vadd.f32 %v809_v61, %v128_v6 }
 0xa1d   :  { %v770_v62 = vadd.f32 %v2031_v50, %v768_v60 }
 0xa1e   :  { %v813_v63 = vmul.f32 %v812_v12, %v1976_v19 }
 0xa1f   :  { %v771_v0 = vmul.f32 %v770_v62, %v1976_v19 }
 0xa20   :  { %v1792_v1 = vpop.eup %1791  ;;  %1793 = vtanh.f32 %v813_v63 }
 0xa21   :  { %1795 = vtanh.f32 %v771_v0  ;;  %v706_v3 = vmul.f32 %v1792_v1, %v1976_v19 }
 0xa23   :  { %v707_v9 = vadd.f32 %v706_v3, %v1979_v23 }
 0xa25   :  { %710 = vrot.lane.b32.xlu0 %v707_v9, %s1931_s17  ;;  %v708_v51 = vmul.f32 %v707_v9, %v2240_v15 }
 0xa26   :  { %v1794_v46 = vpop.eup %1793 }
 0xa27   :  { %v1796_v10 = vpop.eup %1795  ;;  %v815_v13 = vmul.f32 %v1794_v46, %v1976_v19 }
 0xa28   :  { %v773_v16 = vmul.f32 %v1796_v10, %v1976_v19 }
 0xa29   :  { %v816_v18 = vadd.f32 %v815_v13, %v1979_v23 }
 0xa2a   :  { %v774_v24 = vadd.f32 %v773_v16, %v1979_v23 }
 0xa2b   :  { %819 = vrot.lane.b32.xlu2 %v816_v18, %s1931_s17  ;;  %v817_v29 = vmul.f32 %v816_v18, %v2235_v8 }
 0xa2c   :  { %777 = vrot.lane.b32.xlu1 %v774_v24, %s1931_s17  ;;  %v775_v53 = vmul.f32 %v774_v24, %v2244_v44 }
 0xa85   :  { %v820_v25 = vpop.permute.xlu2 %819 }
 0xa86   :  { %v822_v26 = vmul.f32 %v820_v25, %v816_v18 }
 0xa88   :  { %824 = vrot.lane.b32.xlu2 %v822_v26, %s1932_s18 }
 0xa97   :  { %v711_v58 = vpop.permute.xlu0 %710 }
 0xa98   :  { %v713_v27 = vmul.f32 %v711_v58, %v707_v9 }
 0xa9a   :  { %715 = vrot.lane.b32.xlu0 %v713_v27, %s1932_s18 }
 0xa9e   :  { %v778_v28 = vpop.permute.xlu1 %777 }
 0xa9f   :  { %v780_v54 = vmul.f32 %v778_v28, %v774_v24 }
 0xaa1   :  { %782 = vrot.lane.b32.xlu1 %v780_v54, %s1932_s18 }
 0xae2   :  { %v825_v36 = vpop.permute.xlu2 %824 }
 0xae3   :  { %v2297_v43 = vadd.f32 %v825_v36, %v817_v29 }
 0xae5   :  { %1797 = vtanh.f32 %v2297_v43 }
 0xaeb   :  { %v1798_v11 = vpop.eup %1797 }
 0xaec   :  { %830 = vrot.lane.b32.xlu2 %v1798_v11, %s1931_s17 }
 0xb0c   :  { %v716_v52 = vpop.permute.xlu0 %715 }
 0xb0d   :  { %v2302_v45 = vadd.f32 %v716_v52, %v708_v51 }
 0xb0f   :  { %1799 = vtanh.f32 %v2302_v45 }
 0xb13   :  { %v783_v55 = vpop.permute.xlu1 %782 }
 0xb14   :  { %v2306_v56 = vadd.f32 %v783_v55, %v775_v53 }
 0xb15   :  { %v1800_v8 = vpop.eup %1799 }
 0xb16   :  { %1801 = vtanh.f32 %v2306_v56  ;;  %721 = vrot.lane.b32.xlu0 %v1800_v8, %s1931_s17 }
 0xb1c   :  { %v1802_v6 = vpop.eup %1801 }
 0xb1d   :  { %788 = vrot.lane.b32.xlu1 %v1802_v6, %s1931_s17 }
 0xb46   :  { %v831_v59 = vpop.permute.xlu2 %830 }
 0xb47   :  { %v833_v15 = vmul.f32 %v831_v59, %v816_v18 }
 0xb49   :  { %927 = vrot.lane.b32.xlu2 %v833_v15, %s1932_s18 }
 0xb88   :  { %v722_v60 = vpop.permute.xlu0 %721 }
 0xb89   :  { %v724_v61 = vmul.f32 %v722_v60, %v707_v9  ;;  %v131_v9 = vadd.f32 %v1973_v14, %v2147_v47 }
 0xb8b   :  { %835 = vrot.lane.b32.xlu0 %v724_v61, %s1932_s18 }
 0xb8f   :  { %v789_v44 = vpop.permute.xlu1 %788 }
 0xb90   :  { %v791_v12 = vmul.f32 %v789_v44, %v774_v24 }
 0xb92   :  { %860 = vrot.lane.b32.xlu1 %v791_v12, %s1932_s18 }
 0xba3   :  { %v928_v0 = vpop.permute.xlu2 %927 }
 0xbfd   :  { %v836_v62 = vpop.permute.xlu0 %835 }
 0xbfe   :  { %1719 = vmatmul.msk.f32.vlgmr.msra.gmra.mxu2 %vm139_vm4, %v836_v62 }
 0xbff   :  { %1057 = vmatpush.msra.mxu2 %v2094_v30 }
 0xc01   :  { %1058 = vmatpush.msra.mxu2 %v2097_v31 }
 0xc03   :  { %1059 = vmatpush.msra.mxu2 %v2103_v41 }
 0xc04   :  { %v861_v63 = vpop.permute.xlu1 %860 }
 0xc05   :  { %1720 = vmatmul.msk.f32.vlgmr.msrb.gmra.mxu3 %vm139_vm4, %v861_v63  ;;  %1721 = vmatmul.msk.f32.vlgmr.msrb.gmra.mxu1 %vm139_vm4, %v861_v63 }
 0xc06   :  { %1722 = vmatmul.msk.f32.vlgmr.msrb.gmra.mxu2 %vm139_vm4, %v928_v0  ;;  %1099 = vmatpush.msrb.mxu3 %v1989_v32 }
 0xc07   :  { %1060 = vmatpush.msra.mxu2 %v2108_v42  ;;  %1166 = vmatpush.msrb.mxu1 %v1952_v2 }
 0xc08   :  { %1100 = vmatpush.msrb.mxu3 %v1991_v33 }
 0xc09   :  { %1213 = vmatpush.msrb.mxu2 %v2053_v17  ;;  %1167 = vmatpush.msrb.mxu1 %v1955_v4 }
 0xc0a   :  { %1101 = vmatpush.msrb.mxu3 %v1997_v35 }
 0xc0b   :  { %1214 = vmatpush.msrb.mxu2 %v2058_v20  ;;  %1168 = vmatpush.msrb.mxu1 %v1957_v5 }
 0xc0c   :  { %1102 = vmatpush.msrb.mxu3 %v2007_v38 }
 0xc0d   :  { %1215 = vmatpush.msrb.mxu2 %v2063_v21  ;;  %1723 = vmatmul.msk.f32.vlgmr.msra.gmra.mxu3 %vm139_vm4, %v928_v0 }
 0xc0e   :  { %1169 = vmatpush.msrb.mxu1 %v1960_v7  ;;  %1238 = vmatpush.msra.mxu3 %v2094_v30 }
 0xc0f   :  { %1216 = vmatpush.msrb.mxu2 %v2067_v22 }
 0xc10   :  { %1239 = vmatpush.msra.mxu3 %v2097_v31 }
 0xc12   :  { %1240 = vmatpush.msra.mxu3 %v2103_v41 }
 0xc14   :  { %1241 = vmatpush.msra.mxu3 %v2108_v42 }
 0xc81   :  { %v856_v2 = vpop.f32.mrf.mxu2 }
 0xc82   :  { %v923_v5 = vpop.f32.mrf.mxu1 }
 0xc88   :  { %v881_v4 = vpop.f32.mrf.mxu3 }
 0xc89   :  { %v882_v32 = vadd.f32 %v881_v4, %v856_v2  ;;  %v948_v33 = vpop.f32.mrf.mxu2 }
 0xc8a   :  { %v949_v35 = vadd.f32 %v948_v33, %v923_v5  ;;  %v1855_v33 = vld [vmem:[#allocation2 + $0x88] sm:$0xff] }
 0xc8b   :  { %v884_v38 = vadd.f32 %v2155_v57, %v882_v32 }
 0xc8c   :  { %v951_v7 = vadd.f32 %v2031_v50, %v949_v35  ;;  %v1856_v35 = vld [vmem:[#allocation2 + $0x80] sm:$0xff] }
 0xc8d   :  { %v885_v1 = vmul.f32 %v884_v38, %v1976_v19  ;;  %v1857_v38 = vld [vmem:[#allocation2 + $0x78] sm:$0xff] }
 0xc8e   :  { %v952_v3 = vmul.f32 %v951_v7, %v1976_v19  ;;  %v1858_v7 = vld [vmem:[#allocation2 + $0x70] sm:$0xff] }
 0xc8f   :  { %1803 = vtanh.f32 %v885_v1 }
 0xc90   :  { %1805 = vtanh.f32 %v952_v3  ;;  %v990_v46 = vpop.f32.mrf.mxu3  ;;  %v2393_v3 = vld [vmem:[#allocation2 + $0x180] ss:$0 sm:$0xff] }
 0xc91   :  { %v993_v10 = vadd.f32 %v990_v46, %v131_v9 }
 0xc93   :  { %v994_v13 = vmul.f32 %v993_v10, %v1976_v19 }
 0xc95   :  { %v1804_v16 = vpop.eup %1803  ;;  %1807 = vtanh.f32 %v994_v13 }
 0xc96   :  { %v1806_v18 = vpop.eup %1805  ;;  %v887_v24 = vmul.f32 %v1804_v16, %v1976_v19 }
 0xc97   :  { %v954_v25 = vmul.f32 %v1806_v18, %v1976_v19 }
 0xc98   :  { %v888_v26 = vadd.f32 %v887_v24, %v1979_v23 }
 0xc99   :  { %v955_v58 = vadd.f32 %v954_v25, %v1979_v23 }
 0xc9a   :  { %891 = vrot.lane.b32.xlu1 %v888_v26, %s1931_s17  ;;  %v889_v6 = vmul.f32 %v888_v26, %v2302_v45 }
 0xc9b   :  { %v1808_v14 = vpop.eup %1807  ;;  %958 = vrot.lane.b32.xlu0 %v955_v58, %s1931_s17  ;;  %v956_v15 = vmul.f32 %v955_v58, %v2306_v56 }
 0xc9c   :  { %v996_v47 = vmul.f32 %v1808_v14, %v1976_v19 }
 0xc9e   :  { %v997_v27 = vadd.f32 %v996_v47, %v1979_v23 }
 0xca0   :  { %1000 = vrot.lane.b32.xlu2 %v997_v27, %s1931_s17  ;;  %v998_v52 = vmul.f32 %v997_v27, %v2297_v43 }
 0xcfa   :  { %v1001_v28 = vpop.permute.xlu2 %1000 }
 0xcfb   :  { %v1003_v54 = vmul.f32 %v1001_v28, %v997_v27 }
 0xcfd   :  { %1005 = vrot.lane.b32.xlu2 %v1003_v54, %s1932_s18 }
 0xd0c   :  { %v892_v29 = vpop.permute.xlu1 %891 }
 0xd0d   :  { %v894_v36 = vmul.f32 %v892_v29, %v888_v26  ;;  %v959_v11 = vpop.permute.xlu0 %958 }
 0xd0e   :  { %v961_v51 = vmul.f32 %v959_v11, %v955_v58 }
 0xd0f   :  { %896 = vrot.lane.b32.xlu1 %v894_v36, %s1932_s18 }
 0xd10   :  { %963 = vrot.lane.b32.xlu0 %v961_v51, %s1932_s18 }
 0xd57   :  { %v1006_v53 = vpop.permute.xlu2 %1005 }
 0xd58   :  { %v2359_v55 = vadd.f32 %v1006_v53, %v998_v52 }
 0xd5a   :  { %1809 = vtanh.f32 %v2359_v55 }
 0xd60   :  { %v1810_v8 = vpop.eup %1809 }
 0xd61   :  { %1011 = vrot.lane.b32.xlu2 %v1810_v8, %s1931_s17 }
 0xd81   :  { %v897_v59 = vpop.permute.xlu1 %896 }
 0xd82   :  { %v2365_v60 = vadd.f32 %v897_v59, %v889_v6  ;;  %v964_v61 = vpop.permute.xlu0 %963 }
 0xd83   :  { %v2367_v44 = vadd.f32 %v964_v61, %v956_v15 }
 0xd84   :  { %1811 = vtanh.f32 %v2365_v60 }
 0xd85   :  { %1813 = vtanh.f32 %v2367_v44 }
 0xd8a   :  { %v1812_v43 = vpop.eup %1811 }
 0xd8b   :  { %v1814_v12 = vpop.eup %1813  ;;  %902 = vrot.lane.b32.xlu1 %v1812_v43, %s1931_s17 }
 0xd8c   :  { %969 = vrot.lane.b32.xlu0 %v1814_v12, %s1931_s17 }
 0xdbb   :  { %v1012_v62 = vpop.permute.xlu2 %1011 }
 0xdbc   :  { %v1014_v45 = vmul.f32 %v1012_v62, %v997_v27 }
 0xdbe   :  { %1108 = vrot.lane.b32.xlu2 %v1014_v45, %s1932_s18 }
 0xdfd   :  { %v903_v56 = vpop.permute.xlu1 %902 }
 0xdfe   :  { %v905_v63 = vmul.f32 %v903_v56, %v888_v26  ;;  %v970_v0 = vpop.permute.xlu0 %969 }
 0xdff   :  { %v972_v2 = vmul.f32 %v970_v0, %v955_v58 }
 0xe00   :  { %1016 = vrot.lane.b32.xlu1 %v905_v63, %s1932_s18 }
 0xe01   :  { %1041 = vrot.lane.b32.xlu0 %v972_v2, %s1932_s18 }
 0xe18   :  { %v1109_v4 = vpop.permute.xlu2 %1108 }
 0xe19   :  { %1727 = vmatmul.msk.f32.vlgmr.msra.gmra.mxu0 %vm139_vm4, %v1109_v4 }
 0xe1a   :  { %1419 = vmatpush.msra.mxu0 %v2094_v30 }
 0xe1c   :  { %1420 = vmatpush.msra.mxu0 %v2097_v31 }
 0xe1e   :  { %1421 = vmatpush.msra.mxu0 %v2103_v41 }
 0xe20   :  { %1422 = vmatpush.msra.mxu0 %v2108_v42 }
 0xe72   :  { %v1017_v5 = vpop.permute.xlu1 %1016 }
 0xe73   :  { %1724 = vmatmul.msk.f32.vlgmr.msra.gmra.mxu1 %vm139_vm4, %v1017_v5  ;;  %v1042_v32 = vpop.permute.xlu0 %1041 }
 0xe74   :  { %1725 = vmatmul.msk.f32.vlgmr.msra.gmra.mxu2 %vm139_vm4, %v1042_v32  ;;  %1726 = vmatmul.msk.f32.vlgmr.msrb.gmra.mxu3 %vm139_vm4, %v1042_v32 }
 0xe75   :  { %1305 = vmatpush.msra.mxu1 %v1994_v34  ;;  %1347 = vmatpush.msra.mxu2 %v1855_v33  ;;  %v1859_v34 = vld [vmem:[#allocation2 + $0xa8] sm:$0xff] }
 0xe76   :  { %1394 = vmatpush.msrb.mxu3 %v2053_v17  ;;  %v1861_v17 = vld [vmem:[#allocation2 + $0x98] sm:$0xff] }
 0xe77   :  { %1306 = vmatpush.msra.mxu1 %v2004_v37  ;;  %1348 = vmatpush.msra.mxu2 %v1856_v35  ;;  %v1860_v37 = vld [vmem:[#allocation2 + $0xa0] sm:$0xff] }
 0xe78   :  { %1395 = vmatpush.msrb.mxu3 %v2058_v20  ;;  %v1862_v20 = vld [vmem:[#allocation2 + $0x90] sm:$0xff] }
 0xe79   :  { %1307 = vmatpush.msra.mxu1 %v2012_v39  ;;  %1349 = vmatpush.msra.mxu2 %v1857_v38 }
 0xe7a   :  { %1396 = vmatpush.msrb.mxu3 %v2063_v21  ;;  %v134_v21 = vadd.f32 %v2393_v3, %v2149_v48 }
 0xe7b   :  { %1728 = vmatmul.msk.f32.vlgmr.msrb.gmra.mxu1 %vm139_vm4, %v1109_v4  ;;  %1350 = vmatpush.msra.mxu2 %v1858_v7  ;;  %v1864_v7 = vld [vmem:[#allocation2 + $0x48] sm:$0xff] }
 0xe7c   :  { %1308 = vmatpush.msra.mxu1 %v2017_v40  ;;  %1397 = vmatpush.msrb.mxu3 %v2067_v22 }
 0xe7e   :  { %1461 = vmatpush.msrb.mxu1 %v1859_v34  ;;  %v1865_v34 = vld [vmem:[#allocation2 + $0xc8] sm:$0xff] }
 0xe80   :  { %1462 = vmatpush.msrb.mxu1 %v1860_v37  ;;  %v1866_v37 = vld [vmem:[#allocation2 + $0x40] sm:$0xff] }
 0xe82   :  { %1463 = vmatpush.msrb.mxu1 %v1861_v17  ;;  %v1867_v17 = vld [vmem:[#allocation2 + $0xc0] sm:$0xff] }
 0xe84   :  { %1464 = vmatpush.msrb.mxu1 %v1862_v20  ;;  %v1868_v20 = vld [vmem:[#allocation2 + $0x38] sm:$0xff] }
 0xe96   :  { %v1129_v1 = vpop.f32.mrf.mxu0 }
 0xef0   :  { %v1037_v39 = vpop.f32.mrf.mxu1 }
 0xef7   :  { %v1062_v9 = vpop.f32.mrf.mxu2  ;;  %v1104_v46 = vpop.f32.mrf.mxu3 }
 0xef8   :  { %v1063_v40 = vadd.f32 %v1062_v9, %v1037_v39  ;;  %v1130_v10 = vadd.f32 %v1129_v1, %v1104_v46  ;;  %v1171_v22 = vpop.f32.mrf.mxu1  ;;  %v1869_v39 = vld [vmem:[#allocation2 + $0xb8] sm:$0xff]  ;;  %v1870_v1 = vld [vmem:[#allocation2 + $0x30] sm:$0xff] }
 0xef9   :  { %v1174_v13 = vadd.f32 %v1171_v22, %v134_v21 }
 0xefa   :  { %v1065_v16 = vadd.f32 %v2155_v57, %v1063_v40  ;;  %v1132_v18 = vadd.f32 %v2031_v50, %v1130_v10 }
 0xefb   :  { %v1175_v24 = vmul.f32 %v1174_v13, %v1976_v19 }
 0xefc   :  { %v1066_v25 = vmul.f32 %v1065_v16, %v1976_v19  ;;  %v1133_v26 = vmul.f32 %v1132_v18, %v1976_v19  ;;  %v137_v18 = vadd.f32 %v2393_v3, %v2151_v49 }
 0xefd   :  { %1815 = vtanh.f32 %v1175_v24 }
 0xefe   :  { %1817 = vtanh.f32 %v1066_v25 }
 0xeff   :  { %1819 = vtanh.f32 %v1133_v26 }
 0xf03   :  { %v1816_v48 = vpop.eup %1815 }
 0xf04   :  { %v1818_v58 = vpop.eup %1817  ;;  %v1177_v14 = vmul.f32 %v1816_v48, %v1976_v19 }
 0xf05   :  { %v1820_v47 = vpop.eup %1819  ;;  %v1068_v27 = vmul.f32 %v1818_v58, %v1976_v19 }
 0xf06   :  { %v1178_v28 = vadd.f32 %v1177_v14, %v1979_v23  ;;  %v1135_v50 = vmul.f32 %v1820_v47, %v1976_v19 }
 0xf07   :  { %v1069_v54 = vadd.f32 %v1068_v27, %v1979_v23 }
 0xf08   :  { %1181 = vrot.lane.b32.xlu2 %v1178_v28, %s1931_s17  ;;  %v1136_v29 = vadd.f32 %v1135_v50, %v1979_v23  ;;  %v1179_v6 = vmul.f32 %v1178_v28, %v2359_v55 }
 0xf09   :  { %1072 = vrot.lane.b32.xlu0 %v1069_v54, %s1931_s17  ;;  %v1070_v43 = vmul.f32 %v1069_v54, %v2365_v60 }
 0xf0a   :  { %1139 = vrot.lane.b32.xlu1 %v1136_v29, %s1931_s17  ;;  %v1137_v62 = vmul.f32 %v1136_v29, %v2367_v44 }
 0xf62   :  { %v1182_v36 = vpop.permute.xlu2 %1181 }
 0xf63   :  { %v1184_v11 = vmul.f32 %v1182_v36, %v1178_v28 }
 0xf65   :  { %1186 = vrot.lane.b32.xlu2 %v1184_v11, %s1932_s18 }
 0xf7b   :  { %v1073_v51 = vpop.permute.xlu0 %1072 }
 0xf7c   :  { %v1075_v52 = vmul.f32 %v1073_v51, %v1069_v54  ;;  %v1140_v53 = vpop.permute.xlu1 %1139 }
 0xf7d   :  { %v1142_v8 = vmul.f32 %v1140_v53, %v1136_v29 }
 0xf7e   :  { %1077 = vrot.lane.b32.xlu0 %v1075_v52, %s1932_s18 }
 0xf7f   :  { %1144 = vrot.lane.b32.xlu1 %v1142_v8, %s1932_s18 }
 0xfbf   :  { %v1187_v59 = vpop.permute.xlu2 %1186 }
 0xfc0   :  { %v2415_v15 = vadd.f32 %v1187_v59, %v1179_v6 }
 0xfc2   :  { %1821 = vtanh.f32 %v2415_v15 }
 0xfc8   :  { %v1822_v61 = vpop.eup %1821 }
 0xfc9   :  { %1192 = vrot.lane.b32.xlu2 %v1822_v61, %s1931_s17 }
 0xff0   :  { %v1078_v12 = vpop.permute.xlu0 %1077 }
 0xff1   :  { %v2421_v45 = vadd.f32 %v1078_v12, %v1070_v43  ;;  %v1145_v56 = vpop.permute.xlu1 %1144 }
 0xff2   :  { %v2423_v63 = vadd.f32 %v1145_v56, %v1137_v62 }
 0xff3   :  { %1823 = vtanh.f32 %v2421_v45 }
 0xff4   :  { %1825 = vtanh.f32 %v2423_v63 }
 0xff9   :  { %v1824_v55 = vpop.eup %1823 }
 0xffa   :  { %v1826_v0 = vpop.eup %1825  ;;  %1083 = vrot.lane.b32.xlu0 %v1824_v55, %s1931_s17 }
 0xffb   :  { %1150 = vrot.lane.b32.xlu1 %v1826_v0, %s1931_s17 }
0x1023   :  { %v1193_v2 = vpop.permute.xlu2 %1192 }
0x1024   :  { %v1195_v60 = vmul.f32 %v1193_v2, %v1178_v28 }
0x1026   :  { %1289 = vrot.lane.b32.xlu2 %v1195_v60, %s1932_s18 }
0x106c   :  { %v1084_v44 = vpop.permute.xlu0 %1083 }
0x106d   :  { %v1086_v4 = vmul.f32 %v1084_v44, %v1069_v54  ;;  %v1151_v5 = vpop.permute.xlu1 %1150 }
0x106e   :  { %v1153_v32 = vmul.f32 %v1151_v5, %v1136_v29 }
0x106f   :  { %1197 = vrot.lane.b32.xlu0 %v1086_v4, %s1932_s18 }
0x1070   :  { %1222 = vrot.lane.b32.xlu1 %v1153_v32, %s1932_s18 }
0x1080   :  { %v1290_v33 = vpop.permute.xlu2 %1289 }
0x1081   :  { %1732 = vmatmul.msk.f32.vlgmr.msra.gmra.mxu1 %vm139_vm4, %v1290_v33 }
0x10e1   :  { %v1198_v35 = vpop.permute.xlu0 %1197 }
0x10e2   :  { %v1223_v38 = vpop.permute.xlu1 %1222  ;;  %1729 = vmatmul.msk.f32.vlgmr.msrb.gmra.mxu2 %vm139_vm4, %v1198_v35 }
0x10e3   :  { %1730 = vmatmul.msk.f32.vlgmr.msra.gmra.mxu3 %vm139_vm4, %v1223_v38  ;;  %1731 = vmatmul.msk.f32.vlgmr.msrb.gmra.mxu0 %vm139_vm4, %v1223_v38 }
0x10e4   :  { %1486 = vmatpush.msrb.mxu2 %v1864_v7  ;;  %1558 = vmatpush.msrb.mxu0 %v2094_v30  ;;  %v1871_v30 = vld [vmem:[#allocation2 + $0xb0] sm:$0xff] }
0x10e5   :  { %1533 = vmatpush.msra.mxu3 %v1865_v34 }
0x10e6   :  { %1487 = vmatpush.msrb.mxu2 %v1866_v37  ;;  %1559 = vmatpush.msrb.mxu0 %v2097_v31  ;;  %v2441_v31 = vld [vmem:[#allocation2 + $0x188] ss:$0 sm:$0xff] }
0x10e7   :  { %1534 = vmatpush.msra.mxu3 %v1867_v17 }
0x10e8   :  { %1488 = vmatpush.msrb.mxu2 %v1868_v20  ;;  %1560 = vmatpush.msrb.mxu0 %v2103_v41 }
0x10e9   :  { %1535 = vmatpush.msra.mxu3 %v1869_v39 }
0x10ea   :  { %1733 = vmatmul.msk.f32.vlgmr.msra.gmra.mxu2 %vm139_vm4, %v1290_v33  ;;  %1561 = vmatpush.msrb.mxu0 %v2108_v42 }
0x10eb   :  { %1489 = vmatpush.msrb.mxu2 %v1870_v1  ;;  %1536 = vmatpush.msra.mxu3 %v1871_v30  ;;  %v1873_v30 = vld [vmem:[#allocation2 + $0x190] ss:$0 sm:$0xff] }
0x10fe   :  { %v1310_v21 = vpop.f32.mrf.mxu1 }
0x1160   :  { %v1285_v9 = vpop.f32.mrf.mxu0 }
0x1161   :  { %v1311_v46 = vadd.f32 %v1310_v21, %v1285_v9 }
0x1163   :  { %v1313_v40 = vadd.f32 %v2441_v31, %v1311_v46 }
0x1165   :  { %v1314_v10 = vmul.f32 %v1313_v40, %v1976_v19  ;;  %v1218_v41 = vpop.f32.mrf.mxu2 }
0x1166   :  { %v1243_v22 = vpop.f32.mrf.mxu3 }
0x1167   :  { %1827 = vtanh.f32 %v1314_v10  ;;  %v1244_v13 = vadd.f32 %v1243_v22, %v1218_v41 }
0x1169   :  { %v1246_v16 = vadd.f32 %v2155_v57, %v1244_v13 }
0x116b   :  { %v1247_v42 = vmul.f32 %v1246_v16, %v1976_v19 }
0x116d   :  { %v1828_v24 = vpop.eup %1827  ;;  %1829 = vtanh.f32 %v1247_v42  ;;  %v1352_v25 = vpop.f32.mrf.mxu2 }
0x116e   :  { %v1355_v26 = vadd.f32 %v1352_v25, %v137_v18  ;;  %v1316_v48 = vmul.f32 %v1828_v24, %v1976_v19 }
0x1170   :  { %v1356_v58 = vmul.f32 %v1355_v26, %v1976_v19  ;;  %v1317_v14 = vadd.f32 %v1316_v48, %v1979_v23 }
0x1172   :  { %1831 = vtanh.f32 %v1356_v58  ;;  %1320 = vrot.lane.b32.xlu1 %v1317_v14, %s1931_s17  ;;  %v1318_v59 = vmul.f32 %v1317_v14, %v2423_v63 }
0x1173   :  { %v1830_v47 = vpop.eup %1829 }
0x1174   :  { %v1249_v57 = vmul.f32 %v1830_v47, %v1976_v19 }
0x1176   :  { %v1250_v27 = vadd.f32 %v1249_v57, %v1979_v23 }
0x1178   :  { %v1832_v28 = vpop.eup %1831  ;;  %1253 = vrot.lane.b32.xlu0 %v1250_v27, %s1931_s17  ;;  %v1251_v12 = vmul.f32 %v1250_v27, %v2421_v45 }
0x1179   :  { %v1358_v49 = vmul.f32 %v1832_v28, %v1976_v19 }
0x117b   :  { %v1359_v3 = vadd.f32 %v1358_v49, %v1979_v23 }
0x117d   :  { %1362 = vrot.lane.b32.xlu2 %v1359_v3, %s1931_s17  ;;  %v1360_v52 = vmul.f32 %v1359_v3, %v2415_v15 }
0x11d7   :  { %v1363_v50 = vpop.permute.xlu2 %1362 }
0x11d8   :  { %v1365_v54 = vmul.f32 %v1363_v50, %v1359_v3 }
0x11da   :  { %1367 = vrot.lane.b32.xlu2 %v1365_v54, %s1932_s18 }
0x11e4   :  { %v1321_v29 = vpop.permute.xlu1 %1320 }
0x11e5   :  { %v1323_v36 = vmul.f32 %v1321_v29, %v1317_v14 }
0x11e7   :  { %1325 = vrot.lane.b32.xlu1 %v1323_v36, %s1932_s18 }
0x11ea   :  { %v1254_v11 = vpop.permute.xlu0 %1253 }
0x11eb   :  { %v1256_v51 = vmul.f32 %v1254_v11, %v1250_v27 }
0x11ed   :  { %1258 = vrot.lane.b32.xlu0 %v1256_v51, %s1932_s18 }
0x1234   :  { %v1368_v53 = vpop.permute.xlu2 %1367 }
0x1235   :  { %v1370_v8 = vadd.f32 %v1368_v53, %v1360_v52 }
0x1237   :  { %1833 = vtanh.f32 %v1370_v8 }
0x123d   :  { %v1834_v6 = vpop.eup %1833 }
0x123e   :  { %1373 = vrot.lane.b32.xlu2 %v1834_v6, %s1931_s17 }
0x1259   :  { %v1326_v61 = vpop.permute.xlu1 %1325 }
0x125a   :  { %v1328_v43 = vadd.f32 %v1326_v61, %v1318_v59 }
0x125c   :  { %1835 = vtanh.f32 %v1328_v43 }
0x125f   :  { %v1259_v62 = vpop.permute.xlu0 %1258 }
0x1260   :  { %v1261_v56 = vadd.f32 %v1259_v62, %v1251_v12  ;;  %v1591_v62 = vld [vmem:[#allocation2 + $0xe8] sm:$0xff] }
0x1261   :  { %1628 = vmatpush.msra.mxu1 %v1591_v62 }
0x1262   :  { %v1836_v55 = vpop.eup %1835  ;;  %1837 = vtanh.f32 %v1261_v56 }
0x1263   :  { %1331 = vrot.lane.b32.xlu1 %v1836_v55, %s1931_s17  ;;  %v1589_v55 = vld [vmem:[#allocation2 + $0xd8] sm:$0xff] }
0x1268   :  { %v1838_v15 = vpop.eup %1837 }
0x1269   :  { %1264 = vrot.lane.b32.xlu0 %v1838_v15, %s1931_s17 }
0x1298   :  { %v1374_v0 = vpop.permute.xlu2 %1373 }
0x1299   :  { %v1376_v2 = vmul.f32 %v1374_v0, %v1359_v3  ;;  %v1608_v0 = vld [vmem:[#allocation2 + $0x170] sm:$0xff] }
0x129a   :  { %1638 = vmatpush.msra.mxu2 %v1608_v0 }
0x129b   :  { %1470 = vrot.lane.b32.xlu2 %v1376_v2, %s1932_s18  ;;  %v1607_v2 = vld [vmem:[#allocation2 + $0x168] sm:$0xff] }
0x129c   :  { %1639 = vmatpush.msra.mxu2 %v1607_v2 }
0x12d5   :  { %v1332_v60 = vpop.permute.xlu1 %1331 }
0x12d6   :  { %v1334_v63 = vmul.f32 %v1332_v60, %v1317_v14  ;;  %v1606_v60 = vld [vmem:[#allocation2 + $0x160] sm:$0xff] }
0x12d7   :  { %1640 = vmatpush.msra.mxu2 %v1606_v60 }
0x12d8   :  { %1403 = vrot.lane.b32.xlu1 %v1334_v63, %s1932_s18  ;;  %v1605_v63 = vld [vmem:[#allocation2 + $0x158] sm:$0xff] }
0x12d9   :  { %1641 = vmatpush.msra.mxu2 %v1605_v63 }
0x12db   :  { %v1265_v44 = vpop.permute.xlu0 %1264 }
0x12dc   :  { %v1267_v4 = vmul.f32 %v1265_v44, %v1250_v27  ;;  %v1604_v44 = vld [vmem:[#allocation2 + $0x150] sm:$0xff] }
0x12dd   :  { %1642 = vmatpush.msra.mxu2 %v1604_v44 }
0x12de   :  { %1378 = vrot.lane.b32.xlu0 %v1267_v4, %s1932_s18  ;;  %v1603_v4 = vld [vmem:[#allocation2 + $0x148] sm:$0xff] }
0x12df   :  { %1643 = vmatpush.msra.mxu2 %v1603_v4 }
0x12f5   :  { %v1471_v45 = vpop.permute.xlu2 %1470 }
0x12f6   :  { %1737 = vmatmul.msk.f32.vlgmr.msrb.gmra.mxu2 %vm139_vm4, %v1471_v45  ;;  %v1602_v45 = vld [vmem:[#allocation2 + $0x140] sm:$0xff] }
0x12f7   :  { %1644 = vmatpush.msra.mxu2 %v1602_v45 }
0x134a   :  { %v1404_v5 = vpop.permute.xlu1 %1403 }
0x134b   :  { %1735 = vmatmul.msk.f32.vlgmr.msra.gmra.mxu0 %vm139_vm4, %v1404_v5  ;;  %1736 = vmatmul.msk.f32.vlgmr.msrb.gmra.mxu1 %vm139_vm4, %v1404_v5  ;;  %v1601_v5 = vld [vmem:[#allocation2 + $0x138] sm:$0xff] }
0x134c   :  { %1645 = vmatpush.msra.mxu2 %v1601_v5 }
0x1350   :  { %v1379_v32 = vpop.permute.xlu0 %1378 }
0x1351   :  { %1734 = vmatmul.msk.f32.vlgmr.msrb.gmra.mxu3 %vm139_vm4, %v1379_v32  ;;  %v1600_v32 = vld [vmem:[#allocation2 + $0x130] sm:$0xff] }
0x1352   :  { %1646 = vmatpush.msra.mxu2 %v1600_v32 }
0x1379   :  { %v1491_v33 = vpop.f32.mrf.mxu2 }
0x13c8   :  { %v1466_v35 = vpop.f32.mrf.mxu1  ;;  %v1424_v37 = vpop.f32.mrf.mxu0 }
0x13c9   :  { %v1492_v38 = vadd.f32 %v1491_v33, %v1466_v35  ;;  %v1599_v33 = vld [vmem:[#allocation2 + $0x128] sm:$0xff]  ;;  %v1598_v35 = vld [vmem:[#allocation2 + $0x120] sm:$0xff] }
0x13ca   :  { %1647 = vmatpush.msra.mxu2 %v1599_v33 }
0x13cb   :  { %v1494_v7 = vadd.f32 %v2441_v31, %v1492_v38  ;;  %v1597_v38 = vld [vmem:[#allocation2 + $0x118] sm:$0xff] }
0x13cc   :  { %1648 = vmatpush.msra.mxu2 %v1598_v35 }
0x13cd   :  { %v1495_v34 = vmul.f32 %v1494_v7, %v1976_v19  ;;  %v1596_v7 = vld [vmem:[#allocation2 + $0x110] sm:$0xff] }
0x13ce   :  { %1649 = vmatpush.msra.mxu2 %v1597_v38 }
0x13cf   :  { %1839 = vtanh.f32 %v1495_v34 }
0x13d0   :  { %1650 = vmatpush.msra.mxu2 %v1596_v7 }
0x13d4   :  { %v1399_v17 = vpop.f32.mrf.mxu3 }
0x13d5   :  { %v1840_v20 = vpop.eup %1839  ;;  %v1425_v39 = vadd.f32 %v1424_v37, %v1399_v17  ;;  %v1595_v37 = vld [vmem:[#allocation2 + $0x108] sm:$0xff]  ;;  %v1594_v17 = vld [vmem:[#allocation2 + $0x100] sm:$0xff] }
0x13d6   :  { %v1497_v1 = vmul.f32 %v1840_v20, %v1976_v19  ;;  %1651 = vmatpush.msra.mxu2 %v1595_v37  ;;  %v1593_v20 = vld [vmem:[#allocation2 + $0xf8] sm:$0xff] }
0x13d7   :  { %v1427_v21 = vadd.f32 %v1873_v30, %v1425_v39  ;;  %v1753_v39 = vld [vmem:[#allocation2 + $0xf0] ss:$0 sm:$0xff] }
0x13d8   :  { %v1498_v9 = vadd.f32 %v1497_v1, %v1979_v23  ;;  %1652 = vmatpush.msra.mxu2 %v1594_v17 }
0x13d9   :  { %v1428_v46 = vmul.f32 %v1427_v21, %v1976_v19 }
0x13da   :  { %1501 = vrot.lane.b32.xlu1 %v1498_v9, %s1931_s17  ;;  %v1499_v26 = vmul.f32 %v1498_v9, %v1328_v43  ;;  %1653 = vmatpush.msra.mxu2 %v1593_v20 }
0x13db   :  { %1841 = vtanh.f32 %v1428_v46 }
0x13e1   :  { %v1842_v40 = vpop.eup %1841 }
0x13e2   :  { %v1430_v31 = vmul.f32 %v1842_v40, %v1976_v19 }
0x13e4   :  { %v1431_v10 = vadd.f32 %v1430_v31, %v1979_v23 }
0x13e6   :  { %1434 = vrot.lane.b32.xlu0 %v1431_v10, %s1931_s17  ;;  %v1432_v42 = vmul.f32 %v1431_v10, %v1261_v56  ;;  %v1590_v56 = vld [vmem:[#allocation2 + $0xe0] sm:$0xff] }
0x13e7   :  { %1629 = vmatpush.msra.mxu1 %v1590_v56 }
0x13e9   :  { %1630 = vmatpush.msra.mxu1 %v1589_v55 }
0x144c   :  { %v1502_v41 = vpop.permute.xlu1 %1501 }
0x144d   :  { %v1504_v22 = vmul.f32 %v1502_v41, %v1498_v9 }
0x144f   :  { %1506 = vrot.lane.b32.xlu0 %v1504_v22, %s1932_s18 }
0x1458   :  { %v1435_v13 = vpop.permute.xlu0 %1434 }
0x1459   :  { %v1437_v16 = vmul.f32 %v1435_v13, %v1431_v10 }
0x145b   :  { %1439 = vrot.lane.b32.xlu2 %v1437_v16, %s1932_s18 }
0x14b5   :  { %v1440_v18 = vpop.permute.xlu2 %1439 }
0x14b6   :  { %v1442_v24 = vadd.f32 %v1440_v18, %v1432_v42 }
0x14b8   :  { %1843 = vtanh.f32 %v1442_v24 }
0x14be   :  { %v1844_v25 = vpop.eup %1843 }
0x14bf   :  { %1445 = vrot.lane.b32.xlu1 %v1844_v25, %s1931_s17 }
0x14c1   :  { %v1507_v48 = vpop.permute.xlu0 %1506 }
0x14c2   :  { %v1509_v58 = vadd.f32 %v1507_v48, %v1499_v26 }
0x14c4   :  { %1845 = vtanh.f32 %v1509_v58 }
0x14ca   :  { %v1846_v14 = vpop.eup %1845 }
0x14cb   :  { %1512 = vrot.lane.b32.xlu2 %v1846_v14, %s1931_s17 }
0x1525   :  { %v1513_v47 = vpop.permute.xlu2 %1512 }
0x1526   :  { %v1515_v57 = vmul.f32 %v1513_v47, %v1498_v9  ;;  %v1754_v9 = vld [vmem:[#allocation2 + $0x178] ss:$0 sm:$0xff] }
0x1528   :  { %1542 = vrot.lane.b32.xlu1 %v1515_v57, %s1932_s18 }
0x1531   :  { %v1446_v27 = vpop.permute.xlu1 %1445 }
0x1532   :  { %v1448_v28 = vmul.f32 %v1446_v27, %v1431_v10 }
0x1534   :  { %1517 = vrot.lane.b32.xlu0 %v1448_v28, %s1932_s18 }
0x159a   :  { %v1543_v49 = vpop.permute.xlu1 %1542 }
0x159b   :  { %1739 = vmatmul.msk.f32.vlgmr.msrb.gmra.mxu0 %vm139_vm4, %v1543_v49 }
0x15a6   :  { %v1518_v3 = vpop.permute.xlu0 %1517 }
0x15a7   :  { %1738 = vmatmul.msk.f32.vlgmr.msra.gmra.mxu3 %vm139_vm4, %v1518_v3 }
0x1618   :  { %v1563_v50 = vpop.f32.mrf.mxu0 }
0x162a   :  { %v1538_v54 = vpop.f32.mrf.mxu3 }
0x162b   :  { %v1564_v29 = vadd.f32 %v1563_v50, %v1538_v54 }
0x162d   :  { %v1566_v36 = vadd.f32 %v1873_v30, %v1564_v29 }
0x162f   :  { %v1567_v11 = vmul.f32 %v1566_v36, %v1976_v19 }
0x1631   :  { %1847 = vtanh.f32 %v1567_v11 }
0x1637   :  { %v1848_v51 = vpop.eup %1847 }
0x1638   :  { %v1569_v52 = vmul.f32 %v1848_v51, %v1976_v19  ;;  %v1588_v19 = vld [vmem:[#allocation2 + $0xd0] sm:$0xff] }
0x1639   :  { %1631 = vmatpush.msra.mxu1 %v1588_v19 }
0x163a   :  { %v1570_v53 = vadd.f32 %v1569_v52, %v1979_v23 }
0x163c   :  { %1573 = vrot.lane.b32.xlu2 %v1570_v53, %s1931_s17  ;;  %v1571_v59 = vmul.f32 %v1570_v53, %v1442_v24 }
0x1696   :  { %v1574_v8 = vpop.permute.xlu2 %1573 }
0x1697   :  { %v1576_v6 = vmul.f32 %v1574_v8, %v1570_v53 }
0x1699   :  { %1578 = vrot.lane.b32.xlu0 %v1576_v6, %s1932_s18 }
0x170b   :  { %v1579_v61 = vpop.permute.xlu0 %1578 }
0x170c   :  { %v1581_v43 = vadd.f32 %v1579_v61, %v1571_v59 }
0x170e   :  { %1849 = vtanh.f32 %v1581_v43 }
0x1714   :  { %v1850_v12 = vpop.eup %1849 }
0x1715   :  { %1584 = vrot.lane.b32.xlu1 %v1850_v12, %s1931_s17 }
0x1787   :  { %v1585_v23 = vpop.permute.xlu1 %1584 }
0x1788   :  { %v1587_v15 = vmul.f32 %v1585_v23, %v1570_v53 }
0x178a   :  { %1612 = vrot.lane.b32.xlu2 %v1587_v15, %s1932_s18 }
0x17e4   :  { %v1613_v34 = vpop.permute.xlu2 %1612 }
0x17e5   :  { %1740 = vmatmul.msk.f32.vlgmr.msra.gmra.mxu1 %vm139_vm4, %v1613_v34 }
0x1862   :  { %v1633_v1 = vpop.f32.mrf.mxu1 }
0x1863   :  { %v1634_v30 = vadd.f32 %v1753_v39, %v1633_v1 }
0x1865   :  { %v1636_v21 = vmax.f32 %v1634_v30, 0.0 }
0x1867   :  { %1654 = vmatmul.f32.vlgmr.msra.gmra.mxu2 %v1636_v21 }
0x18ea   :  { %v1655_v46 = vpop.f32.mrf.mxu2 }
0x18eb   :  { %v1656_v40 = vadd.f32 %v1754_v9, %v1655_v46 }
0x18ed   :  { %v1741_v31 = vmul.f32 -1.442695, %v1656_v40 }
0x18ef   :  { %1851 = vpow2.f32 %v1741_v31 }
0x18f5   :  { %v1852_v10 = vpop.eup %1851 }
0x18f6   :  { %v1661_v41 = vadd.f32 1.0, %v1852_v10 }
0x18f8   :  { %1853 = vrcp.f32 %v1661_v41  ;;  %v1673_v42 = vand.u32 2147483648, %v1661_v41  ;;  %v1671_v24 = vand.u32 2147483647, %v1661_v41  ;;  %vm1667_vm6 = vweird.f32 %v1661_v41 }
0x18fa   :  { %v1674_v26 = vor.u32 1.1754944e-38, %v1673_v42  ;;  %vm1672_vm8 = vcmp.eq.f32.partialorder %v1671_v24, 8.507059e+37 }
0x18fe   :  { %v1854_v22 = vpop.eup %1853 }
0x18ff   :  { %v1663_v13 = vmul.f32 %v1854_v22, %v1661_v41  ;;  %vm1668_vm5 = vweird.f32 %v1854_v22 }
0x1900   :  { %vm1669_vm7 = vmor %vm1667_vm6, %vm1668_vm5 }
0x1901   :  { %v1664_v16 = vsub.f32 1.0, %v1663_v13 }
0x1903   :  { %v1665_v18 = vmul.f32 %v1854_v22, %v1664_v16 }
0x1905   :  { %v1666_v25 = vadd.f32 %v1854_v22, %v1665_v18 }
0x1907   :  { %v1670_v48 = vsel %vm1669_vm7, %v1854_v22, %v1666_v25 }
0x1908   :  { %v1675_v58 = vsel %vm1672_vm8, %v1674_v26, %v1670_v48 }
0x1909   :  { %1677 = vst [vmem:[#allocation5] sm:$0xff] %v1675_v58 }
0x190a   :  { %1688 = dma.vmem_to_hbm [thread:$0]  %s1684_s5, 128, %s1686_s8, [#allocation4]  }
0x190b   :  { %1924 = dma.done.wait [#allocation4], 128  }
0x190c   :  { %1925 = vsyncadd [#allocation4], 4294967168 }
0x190d   :  { %1693 = vsyncpa [#allocation3], 1 }
0x190e   :  { %1694 = vsyncpa [#allocation4], 1 }

</bundles_post_ra>
